<compile_context>
chip_gen: v5e
topology: v5e:2x2
jax: 0.10.0
libtpu: 0.0.40
codegen_flags: <defaults>
</compile_context>

<pallas_src>
from functools import partial

import jax
import jax.numpy as jnp
from jax import lax
from jax.experimental import pallas as pl
from jax.experimental.pallas import tpu as pltpu


# ----------------------------- Pallas kernels ------------------------------

def encoder_kernel(x_ref, w_ref, b_ref, o_ref, *, inv_hw):
    """Conv-as-matmul + bias + ReLU + global average pool (tiled over N, HW).

    x_ref: (tn, K, thw) bf16  im2col patches (K=9*C on sublanes, HW on lanes)
    w_ref: (K, Fp)      bf16  conv weights (F zero-padded to 128 lanes)
    b_ref: (1, Fp)      f32   bias (zero-padded)
    o_ref: (tn, Fp)     f32   pooled features; resident across the HW axis
    """
    h = pl.program_id(1)

    @pl.when(h == 0)
    def _():
        o_ref[...] = jnp.zeros_like(o_ref)

    w = w_ref[...]
    b = b_ref[...]
    tn = x_ref.shape[0]

    parts = []
    for n in range(tn):                         # small static unroll (tn <= 8)
        xn = x_ref[n]                           # (K, thw) bf16, lane-dense
        y = lax.dot_general(xn, w, (((0,), (0,)), ((), ())),
                            preferred_element_type=jnp.float32)   # (thw, Fp)
        y = jnp.maximum(y + b, 0.0)                               # bias + ReLU
        parts.append(jnp.sum(y, axis=0, keepdims=True))           # (1, Fp)
    o_ref[...] += jnp.concatenate(parts, axis=0)                  # partial sums

    @pl.when(h == pl.num_programs(1) - 1)
    def _():
        o_ref[...] = o_ref[...] * inv_hw        # AdaptiveAvgPool2d((1, 1))


def _merge_topk(d, bd_ref, bi_ref, idx_ref, k):
    """Streaming per-row top-k merge of one (tm, tcol) distance tile.

    bd_ref / bi_ref: (tm, k) running best distances / global column indices.
    idx_ref:         (tm, k) int32 output block (written at the last col step).
    """
    i = pl.program_id(0)
    j = pl.program_id(1)
    tm, tcol = d.shape

    row_g = i * tm + lax.broadcasted_iota(jnp.int32, (tm, tcol), 0)
    col_g = j * tcol + lax.broadcasted_iota(jnp.int32, (tm, tcol), 1)
    d = jnp.where(row_g == col_g, 1e30, d)      # exclude self-edges

    @pl.when(j == 0)
    def _():
        bd_ref[...] = jnp.full(bd_ref.shape, 1e30, dtype=bd_ref.dtype)
        bi_ref[...] = jnp.zeros(bi_ref.shape, dtype=bi_ref.dtype)

    cand_d = jnp.concatenate([bd_ref[...], d], axis=1)        # (tm, k + tcol)
    cand_i = jnp.concatenate([bi_ref[...], col_g], axis=1)

    best_d, best_i = [], []
    for _ in range(k):                          # selection: k smallest, sorted
        m = jnp.min(cand_d, axis=1, keepdims=True)                     # (tm, 1)
        sel = jnp.min(jnp.where(cand_d <= m, cand_i, 2147483647),
                      axis=1, keepdims=True)                           # (tm, 1)
        best_d.append(m)
        best_i.append(sel)
        cand_d = jnp.where(cand_i == sel, 3e38, cand_d)
    bd_ref[...] = jnp.concatenate(best_d, axis=1)
    bi_ref[...] = jnp.concatenate(best_i, axis=1)

    @pl.when(j == pl.num_programs(1) - 1)
    def _():
        idx_ref[...] = bi_ref[...]


def knn_feats_kernel(xr_ref, xc_ref, sqr_ref, sqc_ref, idx_ref, bd_ref, bi_ref, *, k):
    """Feature-space kNN: gram-trick L2 with precomputed norms + streaming top-k."""
    gram = lax.dot_general(xr_ref[...], xc_ref[...], (((1,), (1,)), ((), ())),
                           preferred_element_type=jnp.float32)      # (tm, tcol)
    d = jnp.maximum(sqr_ref[...] + sqc_ref[...] - 2.0 * gram, 0.0)
    _merge_topk(d, bd_ref, bi_ref, idx_ref, k)


def knn_coords_kernel(xr_ref, xct_ref, idx_ref, bd_ref, bi_ref, *, k):
    """Coordinate (D=2) kNN: exact VPU broadcast differences + streaming top-k."""
    xr = xr_ref[...]                            # (tm, 2)  f32
    xct = xct_ref[...]                          # (2, tcol) f32
    dx = xr[:, 0:1] - xct[0:1, :]
    dy = xr[:, 1:2] - xct[1:2, :]
    d = dx * dx + dy * dy
    _merge_topk(d, bd_ref, bi_ref, idx_ref, k)


# ------------------------------ wrappers -----------------------------------

def _run_encoder(patches, w_mat, bias, *, tn, thw):
    N, K, HW = patches.shape
    Fp = w_mat.shape[1]
    grid = (N // tn, HW // thw)
    return pl.pallas_call(
        partial(encoder_kernel, inv_hw=1.0 / HW),
        out_shape=jax.ShapeDtypeStruct((N, Fp), jnp.float32),
        grid_spec=pltpu.PrefetchScalarGridSpec(
            num_scalar_prefetch=0,
            grid=grid,
            in_specs=[pl.BlockSpec((tn, K, thw), lambda i, h: (i, 0, h)),
                      pl.BlockSpec((K, Fp), lambda i, h: (0, 0)),
                      pl.BlockSpec((1, Fp), lambda i, h: (0, 0))],
            out_specs=pl.BlockSpec((tn, Fp), lambda i, h: (i, 0))),
        compiler_params=pltpu.CompilerParams(
            dimension_semantics=("parallel", "arbitrary")),
    )(patches, w_mat, bias)


def _knn_feats(x, k, *, tm, tcol):
    """Exact brute-force kNN on features (squared L2), no NxN materialization."""
    N, Fp = x.shape
    sq = jnp.sum(x * x, axis=1, keepdims=True)          # (N, 1) hoisted norms
    sq_t = sq.reshape(1, N)                             # (1, N)
    grid = (N // tm, N // tcol)
    return pl.pallas_call(
        partial(knn_feats_kernel, k=k),
        out_shape=jax.ShapeDtypeStruct((N, k), jnp.int32),
        grid_spec=pltpu.PrefetchScalarGridSpec(
            num_scalar_prefetch=0,
            grid=grid,
            in_specs=[pl.BlockSpec((tm, Fp), lambda i, j: (i, 0)),
                      pl.BlockSpec((tcol, Fp), lambda i, j: (j, 0)),
                      pl.BlockSpec((tm, 1), lambda i, j: (i, 0)),
                      pl.BlockSpec((1, tcol), lambda i, j: (0, j))],
            out_specs=pl.BlockSpec((tm, k), lambda i, j: (i, 0)),
            scratch_shapes=[pltpu.VMEM((tm, k), jnp.float32),
                            pltpu.VMEM((tm, k), jnp.int32)]),
        compiler_params=pltpu.CompilerParams(
            dimension_semantics=("parallel", "arbitrary")),
    )(x, x, sq, sq_t)


def _knn_coords(coords, k, *, tm, tcol):
    """Exact brute-force kNN on 2-D coordinates (squared L2), VPU only."""
    N, D = coords.shape
    assert D == 2
    coords_t = coords.T                                 # (2, N) tiny transpose
    grid = (N // tm, N // tcol)
    return pl.pallas_call(
        partial(knn_coords_kernel, k=k),
        out_shape=jax.ShapeDtypeStruct((N, k), jnp.int32),
        grid_spec=pltpu.PrefetchScalarGridSpec(
            num_scalar_prefetch=0,
            grid=grid,
            in_specs=[pl.BlockSpec((tm, 2), lambda i, j: (i, 0)),
                      pl.BlockSpec((2, tcol), lambda i, j: (0, j))],
            out_specs=pl.BlockSpec((tm, k), lambda i, j: (i, 0)),
            scratch_shapes=[pltpu.VMEM((tm, k), jnp.float32),
                            pltpu.VMEM((tm, k), jnp.int32)]),
        compiler_params=pltpu.CompilerParams(
            dimension_semantics=("parallel", "arbitrary")),
    )(coords, coords_t)


# tile pickers (respect the (8, 128) block constraints; fall back to full extent)

def _pick_tn(n):
    # output block rows must be a multiple of 8 or equal N (sublane granularity)
    if n % 8 == 0:
        return 8
    return n


def _pick_thw(hw):
    for t in (1024, 512, 256, 128):
        if hw % t == 0:
            return t
    return hw


def _pick_rows(n):
    # prefer >= 2 programs on the parallel row axis (v7x has 2 TensorCores)
    for t in (512, 256, 128, 64, 32, 16, 8):
        if n % t == 0 and n // t >= 2:
            return t
    return n


def _pick_cols(n):
    # column blocks sit on the lane axis of the transposed coords / norms
    for t in (512, 256, 128):
        if n % t == 0:
            return t
    return n


def imgs2graph_forward(images_nchw, coords, params, knn=8):
    """JAX/Pallas equivalent of imgs2graph.forward."""
    # ----- Encoder: features = GAP(ReLU(conv3x3(images))) -----
    # Cast to bf16 BEFORE im2col so the 9x-expanded buffer is never f32.
    # TODO(synk): fuse im2col (halo DMA + in-VMEM taps) into the kernel.
    x = images_nchw.astype(jnp.bfloat16)                          # (N, C, H, W)
    N, C, H, W = x.shape
    xp = jnp.pad(x, ((0, 0), (0, 0), (1, 1), (1, 1)))
    taps = [xp[:, :, di:di + H, dj:dj + W] for di in range(3) for dj in range(3)]
    # (N, K=9*C, HW): K on sublanes, HW lane-dense.
    patches = jnp.stack(taps, axis=1).reshape(N, 9 * C, H * W)

    F = params['w_mat'].shape[1]
    Fp = -(-F // 128) * 128                                       # lane-pad F
    w_mat = jnp.pad(params['w_mat'], ((0, 0), (0, Fp - F))).astype(jnp.bfloat16)
    bias = jnp.pad(params['bias'], ((0, 0), (0, Fp - F))).astype(jnp.float32)

    tn = _pick_tn(N)
    thw = _pick_thw(H * W)
    features_p = _run_encoder(patches, w_mat, bias, tn=tn, thw=thw)  # (N, Fp) f32
    features = features_p[:, :F]                                     # (N, F)

    coords = coords.astype(jnp.float32)
    num_patches = coords.shape[0]
    assert num_patches == features.shape[0]
    radius = knn + 1
    if num_patches <= radius:
        radius = num_patches
    k = radius - 1

    tm = _pick_rows(num_patches)
    tcol = _pick_cols(num_patches)

    # ----- spatial edges: kNN on coordinates; latent edges: kNN on features ----
    idx_spatial = _knn_coords(coords, k, tm=tm, tcol=tcol)           # (N, k)
    idx_latent = _knn_feats(features_p, k, tm=tm, tcol=tcol)         # zero-padded
    #                                         feature cols don't change L2

    a = jnp.repeat(jnp.arange(num_patches, dtype=jnp.int32), k)
    edge_spatial = jnp.stack([a, idx_spatial.reshape(-1)], axis=0)   # (2, N*k)
    edge_latent = jnp.stack([a, idx_latent.reshape(-1)], axis=0)

    # torch_geometric.data.Data -> plain dict
    return {'x': features,
            'edge_index': edge_spatial,
            'edge_latent': edge_latent,
            'centroid': coords}


# ------------------------------ main ----------------------------------------

if __name__ == "__main__":
    key = jax.random.PRNGKey(0)
    k_img, k_coord, k_w, k_b = jax.random.split(key, 4)

    # small bag of image patches (PyTorch NCHW convention at the boundary)
    N, C, H, W = 8, 3, 16, 16
    F_OUT = 32
    KNN = 4

    images = jax.random.normal(k_img, (N, C, H, W), dtype=jnp.float32)
    coords = jax.random.uniform(k_coord, (N, 2), dtype=jnp.float32,
                                minval=0.0, maxval=100.0)

    # deterministic synthetic conv weights, PyTorch conv layout (F, C, kH, kW)
    w_torch = jax.random.normal(k_w, (F_OUT, C, 3, 3), dtype=jnp.float32) * 0.1
    bias = jax.random.normal(k_b, (F_OUT,), dtype=jnp.float32) * 0.01
    # reorder to match the patch K ordering ((di*3+dj)*C + c, f)
    w_mat = jnp.transpose(w_torch, (2, 3, 1, 0)).reshape(9 * C, F_OUT)
    params = {'w_mat': w_mat, 'bias': bias.reshape(1, F_OUT)}

    G = imgs2graph_forward(images, coords, params, knn=KNN)
    jax.tree_util.tree_map(jax.block_until_ready, G)

    assert G['x'].shape == (N, F_OUT)
    assert G['edge_index'].shape == (2, N * KNN)
    assert G['edge_latent'].shape == (2, N * KNN)
    assert G['centroid'].shape == (N, 2)
    print("KERNEL_OK")
</pallas_src>

<mosaic_0001>
module attributes {stable_mosaic.version = 11 : i64} {
  func.func @encoder_kernel(%arg0: i32, %arg1: i32, %arg2: memref<8x27x256xbf16, #tpu.memory_space<vmem>>, %arg3: memref<27x128xbf16, #tpu.memory_space<vmem>>, %arg4: memref<1x128xf32, #tpu.memory_space<vmem>>, %arg5: memref<8x128xf32, #tpu.memory_space<vmem>>) attributes {dimension_semantics = [#tpu.dimension_semantics<parallel>, #tpu.dimension_semantics<arbitrary>], iteration_bounds = array<i64: 1, 1>, scalar_prefetch = 0 : i64, scratch_operands = 0 : i64, tpu.core_type = #tpu.core_type<tc>, window_params = [{transform_indices = @transform_0, window_bounds = array<i64: 8, 27, 256>}, {pipeline_mode = #tpu.pipeline_mode<synchronous>, transform_indices = @transform_1, window_bounds = array<i64: 27, 128>}, {pipeline_mode = #tpu.pipeline_mode<synchronous>, transform_indices = @transform_2, window_bounds = array<i64: 1, 128>}, {transform_indices = @transform_3, window_bounds = array<i64: 8, 128>}]} {
    %c0_i32 = arith.constant 0 : i32
    %0 = arith.cmpi eq, %arg1, %c0_i32 : i32
    %1 = arith.extui %0 : i1 to i32
    %c0_i32_0 = arith.constant 0 : i32
    %2 = arith.cmpi ne, %1, %c0_i32_0 : i32
    scf.if %2 {
      %cst_50 = arith.constant 0.000000e+00 : f32
      %84 = vector.broadcast %cst_50 : f32 to vector<8x128xf32>
      %c0_51 = arith.constant 0 : index
      %c0_52 = arith.constant 0 : index
      %85 = vector.load %arg5[%c0_51, %c0_52] : memref<8x128xf32, #tpu.memory_space<vmem>>, vector<8x128xf32>
      tpu.vector_store %arg5[%c0_51, %c0_52], %84 {strides = array<i32>} : memref<8x128xf32, #tpu.memory_space<vmem>>, vector<8x128xf32>,
    } else {
    }
    %c0 = arith.constant 0 : index
    %c0_1 = arith.constant 0 : index
    %3 = vector.load %arg3[%c0, %c0_1] : memref<27x128xbf16, #tpu.memory_space<vmem>>, vector<27x128xbf16>
    %c0_2 = arith.constant 0 : index
    %c0_3 = arith.constant 0 : index
    %4 = vector.load %arg4[%c0_2, %c0_3] : memref<1x128xf32, #tpu.memory_space<vmem>>, vector<1x128xf32>
    %c0_4 = arith.constant 0 : index
    %c0_5 = arith.constant 0 : index
    %c0_6 = arith.constant 0 : index
    %5 = vector.load %arg2[%c0_4, %c0_5, %c0_6] : memref<8x27x256xbf16, #tpu.memory_space<vmem>>, vector<1x27x256xbf16>
    %6 = vector.shape_cast %5 : vector<1x27x256xbf16> to vector<27x256xbf16>
    %cst = arith.constant dense<0.000000e+00> : vector<256x128xf32>
    %7 = tpu.matmul %6, %3, %cst {dimension_numbers = #tpu.dot_dimension_numbers<[0], [0], [1], [1], [0, 1, 1, 1], [], []>} : vector<27x256xbf16>, vector<27x128xbf16>, vector<256x128xf32> -> vector<256x128xf32>
    %8 = vector.broadcast %4 : vector<1x128xf32> to vector<256x128xf32>
    %9 = arith.addf %7, %8 : vector<256x128xf32>
    %cst_7 = arith.constant 0.000000e+00 : f32
    %10 = vector.broadcast %cst_7 : f32 to vector<256x128xf32>
    %11 = arith.maximumf %9, %10 : vector<256x128xf32>
    %cst_8 = arith.constant dense<0.000000e+00> : vector<128xf32>
    %12 = vector.multi_reduction <add>, %11, %cst_8 [0] : vector<256x128xf32> to vector<128xf32>
    %13 = vector.shape_cast %12 : vector<128xf32> to vector<1x128xf32>
    %c1 = arith.constant 1 : index
    %c0_9 = arith.constant 0 : index
    %c0_10 = arith.constant 0 : index
    %14 = vector.load %arg2[%c1, %c0_9, %c0_10] : memref<8x27x256xbf16, #tpu.memory_space<vmem>>, vector<1x27x256xbf16>
    %15 = vector.shape_cast %14 : vector<1x27x256xbf16> to vector<27x256xbf16>
    %cst_11 = arith.constant dense<0.000000e+00> : vector<256x128xf32>
    %16 = tpu.matmul %15, %3, %cst_11 {dimension_numbers = #tpu.dot_dimension_numbers<[0], [0], [1], [1], [0, 1, 1, 1], [], []>} : vector<27x256xbf16>, vector<27x128xbf16>, vector<256x128xf32> -> vector<256x128xf32>
    %17 = vector.broadcast %4 : vector<1x128xf32> to vector<256x128xf32>
    %18 = arith.addf %16, %17 : vector<256x128xf32>
    %cst_12 = arith.constant 0.000000e+00 : f32
    %19 = vector.broadcast %cst_12 : f32 to vector<256x128xf32>
    %20 = arith.maximumf %18, %19 : vector<256x128xf32>
    %cst_13 = arith.constant dense<0.000000e+00> : vector<128xf32>
    %21 = vector.multi_reduction <add>, %20, %cst_13 [0] : vector<256x128xf32> to vector<128xf32>
    %22 = vector.shape_cast %21 : vector<128xf32> to vector<1x128xf32>
    %c2 = arith.constant 2 : index
    %c0_14 = arith.constant 0 : index
    %c0_15 = arith.constant 0 : index
    %23 = vector.load %arg2[%c2, %c0_14, %c0_15] : memref<8x27x256xbf16, #tpu.memory_space<vmem>>, vector<1x27x256xbf16>
    %24 = vector.shape_cast %23 : vector<1x27x256xbf16> to vector<27x256xbf16>
    %cst_16 = arith.constant dense<0.000000e+00> : vector<256x128xf32>
    %25 = tpu.matmul %24, %3, %cst_16 {dimension_numbers = #tpu.dot_dimension_numbers<[0], [0], [1], [1], [0, 1, 1, 1], [], []>} : vector<27x256xbf16>, vector<27x128xbf16>, vector<256x128xf32> -> vector<256x128xf32>
    %26 = vector.broadcast %4 : vector<1x128xf32> to vector<256x128xf32>
    %27 = arith.addf %25, %26 : vector<256x128xf32>
    %cst_17 = arith.constant 0.000000e+00 : f32
    %28 = vector.broadcast %cst_17 : f32 to vector<256x128xf32>
    %29 = arith.maximumf %27, %28 : vector<256x128xf32>
    %cst_18 = arith.constant dense<0.000000e+00> : vector<128xf32>
    %30 = vector.multi_reduction <add>, %29, %cst_18 [0] : vector<256x128xf32> to vector<128xf32>
    %31 = vector.shape_cast %30 : vector<128xf32> to vector<1x128xf32>
    %c3 = arith.constant 3 : index
    %c0_19 = arith.constant 0 : index
    %c0_20 = arith.constant 0 : index
    %32 = vector.load %arg2[%c3, %c0_19, %c0_20] : memref<8x27x256xbf16, #tpu.memory_space<vmem>>, vector<1x27x256xbf16>
    %33 = vector.shape_cast %32 : vector<1x27x256xbf16> to vector<27x256xbf16>
    %cst_21 = arith.constant dense<0.000000e+00> : vector<256x128xf32>
    %34 = tpu.matmul %33, %3, %cst_21 {dimension_numbers = #tpu.dot_dimension_numbers<[0], [0], [1], [1], [0, 1, 1, 1], [], []>} : vector<27x256xbf16>, vector<27x128xbf16>, vector<256x128xf32> -> vector<256x128xf32>
    %35 = vector.broadcast %4 : vector<1x128xf32> to vector<256x128xf32>
    %36 = arith.addf %34, %35 : vector<256x128xf32>
    %cst_22 = arith.constant 0.000000e+00 : f32
    %37 = vector.broadcast %cst_22 : f32 to vector<256x128xf32>
    %38 = arith.maximumf %36, %37 : vector<256x128xf32>
    %cst_23 = arith.constant dense<0.000000e+00> : vector<128xf32>
    %39 = vector.multi_reduction <add>, %38, %cst_23 [0] : vector<256x128xf32> to vector<128xf32>
    %40 = vector.shape_cast %39 : vector<128xf32> to vector<1x128xf32>
    %c4 = arith.constant 4 : index
    %c0_24 = arith.constant 0 : index
    %c0_25 = arith.constant 0 : index
    %41 = vector.load %arg2[%c4, %c0_24, %c0_25] : memref<8x27x256xbf16, #tpu.memory_space<vmem>>, vector<1x27x256xbf16>
    %42 = vector.shape_cast %41 : vector<1x27x256xbf16> to vector<27x256xbf16>
    %cst_26 = arith.constant dense<0.000000e+00> : vector<256x128xf32>
    %43 = tpu.matmul %42, %3, %cst_26 {dimension_numbers = #tpu.dot_dimension_numbers<[0], [0], [1], [1], [0, 1, 1, 1], [], []>} : vector<27x256xbf16>, vector<27x128xbf16>, vector<256x128xf32> -> vector<256x128xf32>
    %44 = vector.broadcast %4 : vector<1x128xf32> to vector<256x128xf32>
    %45 = arith.addf %43, %44 : vector<256x128xf32>
    %cst_27 = arith.constant 0.000000e+00 : f32
    %46 = vector.broadcast %cst_27 : f32 to vector<256x128xf32>
    %47 = arith.maximumf %45, %46 : vector<256x128xf32>
    %cst_28 = arith.constant dense<0.000000e+00> : vector<128xf32>
    %48 = vector.multi_reduction <add>, %47, %cst_28 [0] : vector<256x128xf32> to vector<128xf32>
    %49 = vector.shape_cast %48 : vector<128xf32> to vector<1x128xf32>
    %c5 = arith.constant 5 : index
    %c0_29 = arith.constant 0 : index
    %c0_30 = arith.constant 0 : index
    %50 = vector.load %arg2[%c5, %c0_29, %c0_30] : memref<8x27x256xbf16, #tpu.memory_space<vmem>>, vector<1x27x256xbf16>
    %51 = vector.shape_cast %50 : vector<1x27x256xbf16> to vector<27x256xbf16>
    %cst_31 = arith.constant dense<0.000000e+00> : vector<256x128xf32>
    %52 = tpu.matmul %51, %3, %cst_31 {dimension_numbers = #tpu.dot_dimension_numbers<[0], [0], [1], [1], [0, 1, 1, 1], [], []>} : vector<27x256xbf16>, vector<27x128xbf16>, vector<256x128xf32> -> vector<256x128xf32>
    %53 = vector.broadcast %4 : vector<1x128xf32> to vector<256x128xf32>
    %54 = arith.addf %52, %53 : vector<256x128xf32>
    %cst_32 = arith.constant 0.000000e+00 : f32
    %55 = vector.broadcast %cst_32 : f32 to vector<256x128xf32>
    %56 = arith.maximumf %54, %55 : vector<256x128xf32>
    %cst_33 = arith.constant dense<0.000000e+00> : vector<128xf32>
    %57 = vector.multi_reduction <add>, %56, %cst_33 [0] : vector<256x128xf32> to vector<128xf32>
    %58 = vector.shape_cast %57 : vector<128xf32> to vector<1x128xf32>
    %c6 = arith.constant 6 : index
    %c0_34 = arith.constant 0 : index
    %c0_35 = arith.constant 0 : index
    %59 = vector.load %arg2[%c6, %c0_34, %c0_35] : memref<8x27x256xbf16, #tpu.memory_space<vmem>>, vector<1x27x256xbf16>
    %60 = vector.shape_cast %59 : vector<1x27x256xbf16> to vector<27x256xbf16>
    %cst_36 = arith.constant dense<0.000000e+00> : vector<256x128xf32>
    %61 = tpu.matmul %60, %3, %cst_36 {dimension_numbers = #tpu.dot_dimension_numbers<[0], [0], [1], [1], [0, 1, 1, 1], [], []>} : vector<27x256xbf16>, vector<27x128xbf16>, vector<256x128xf32> -> vector<256x128xf32>
    %62 = vector.broadcast %4 : vector<1x128xf32> to vector<256x128xf32>
    %63 = arith.addf %61, %62 : vector<256x128xf32>
    %cst_37 = arith.constant 0.000000e+00 : f32
    %64 = vector.broadcast %cst_37 : f32 to vector<256x128xf32>
    %65 = arith.maximumf %63, %64 : vector<256x128xf32>
    %cst_38 = arith.constant dense<0.000000e+00> : vector<128xf32>
    %66 = vector.multi_reduction <add>, %65, %cst_38 [0] : vector<256x128xf32> to vector<128xf32>
    %67 = vector.shape_cast %66 : vector<128xf32> to vector<1x128xf32>
    %c7 = arith.constant 7 : index
    %c0_39 = arith.constant 0 : index
    %c0_40 = arith.constant 0 : index
    %68 = vector.load %arg2[%c7, %c0_39, %c0_40] : memref<8x27x256xbf16, #tpu.memory_space<vmem>>, vector<1x27x256xbf16>
    %69 = vector.shape_cast %68 : vector<1x27x256xbf16> to vector<27x256xbf16>
    %cst_41 = arith.constant dense<0.000000e+00> : vector<256x128xf32>
    %70 = tpu.matmul %69, %3, %cst_41 {dimension_numbers = #tpu.dot_dimension_numbers<[0], [0], [1], [1], [0, 1, 1, 1], [], []>} : vector<27x256xbf16>, vector<27x128xbf16>, vector<256x128xf32> -> vector<256x128xf32>
    %71 = vector.broadcast %4 : vector<1x128xf32> to vector<256x128xf32>
    %72 = arith.addf %70, %71 : vector<256x128xf32>
    %cst_42 = arith.constant 0.000000e+00 : f32
    %73 = vector.broadcast %cst_42 : f32 to vector<256x128xf32>
    %74 = arith.maximumf %72, %73 : vector<256x128xf32>
    %cst_43 = arith.constant dense<0.000000e+00> : vector<128xf32>
    %75 = vector.multi_reduction <add>, %74, %cst_43 [0] : vector<256x128xf32> to vector<128xf32>
    %76 = vector.shape_cast %75 : vector<128xf32> to vector<1x128xf32>
    %c0_44 = arith.constant 0 : index
    %c0_45 = arith.constant 0 : index
    %77 = vector.load %arg5[%c0_44, %c0_45] : memref<8x128xf32, #tpu.memory_space<vmem>>, vector<8x128xf32>
    %78 = tpu.concatenate %13, %22, %31, %40, %49, %58, %67, %76 in 0 : vector<1x128xf32>, vector<1x128xf32>, vector<1x128xf32>, vector<1x128xf32>, vector<1x128xf32>, vector<1x128xf32>, vector<1x128xf32>, vector<1x128xf32> -> vector<8x128xf32>
    %79 = arith.addf %77, %78 : vector<8x128xf32>
    %c0_46 = arith.constant 0 : index
    %c0_47 = arith.constant 0 : index
    %80 = vector.load %arg5[%c0_46, %c0_47] : memref<8x128xf32, #tpu.memory_space<vmem>>, vector<8x128xf32>
    tpu.vector_store %arg5[%c0_46, %c0_47], %79 {strides = array<i32>} : memref<8x128xf32, #tpu.memory_space<vmem>>, vector<8x128xf32>,
    %c0_i32_48 = arith.constant 0 : i32
    %81 = arith.cmpi eq, %arg1, %c0_i32_48 : i32
    %82 = arith.extui %81 : i1 to i32
    %c0_i32_49 = arith.constant 0 : i32
    %83 = arith.cmpi ne, %82, %c0_i32_49 : i32
    scf.if %83 {
      %c0_50 = arith.constant 0 : index
      %c0_51 = arith.constant 0 : index
      %84 = vector.load %arg5[%c0_50, %c0_51] : memref<8x128xf32, #tpu.memory_space<vmem>>, vector<8x128xf32>
      %cst_52 = arith.constant 3.906250e-03 : f32
      %85 = vector.broadcast %cst_52 : f32 to vector<8x128xf32>
      %86 = arith.mulf %84, %85 : vector<8x128xf32>
      %c0_53 = arith.constant 0 : index
      %c0_54 = arith.constant 0 : index
      %87 = vector.load %arg5[%c0_53, %c0_54] : memref<8x128xf32, #tpu.memory_space<vmem>>, vector<8x128xf32>
      tpu.vector_store %arg5[%c0_53, %c0_54], %86 {strides = array<i32>} : memref<8x128xf32, #tpu.memory_space<vmem>>, vector<8x128xf32>,
    } else {
    }
    return
  }
  func.func @transform_0(%arg0: i32, %arg1: i32) -> (i32, i32, i32) {
    %c0_i32 = arith.constant 0 : i32
    %c0_i32_0 = arith.constant 0 : i32
    return %arg0, %c0_i32, %arg1 : i32, i32, i32
  }
  func.func @transform_1(%arg0: i32, %arg1: i32) -> (i32, i32) {
    %c0_i32 = arith.constant 0 : i32
    %c0_i32_0 = arith.constant 0 : i32
    %c0_i32_1 = arith.constant 0 : i32
    return %c0_i32, %c0_i32_0 : i32, i32
  }
  func.func @transform_2(%arg0: i32, %arg1: i32) -> (i32, i32) {
    %c0_i32 = arith.constant 0 : i32
    %c0_i32_0 = arith.constant 0 : i32
    %c0_i32_1 = arith.constant 0 : i32
    return %c0_i32, %c0_i32_0 : i32, i32
  }
  func.func @transform_3(%arg0: i32, %arg1: i32) -> (i32, i32) {
    %c0_i32 = arith.constant 0 : i32
    %c0_i32_0 = arith.constant 0 : i32
    return %arg0, %c0_i32 : i32, i32
  }
}

</mosaic_0001>

<bundles_post_ra>
// kernel: tpu_custom_call.1
= control target key start
LH: loop header
LB: loop body
LE: loop exit
PB: predicated region body
PF: predicated region fallthrough
CT: control target
= control target key end

     0   :  { %s3357_s0 = inlined_call_operand.vmem [shape: bf16[8,27,256], index: 0, kind: input, shape index: {}]   ;;  %s3358_s1 = inlined_call_operand.vmem [shape: bf16[27,128], index: 1, kind: input, shape index: {}]   ;;  %s3359_s2 = inlined_call_operand.vmem [shape: f32[1,128], index: 2, kind: input, shape index: {}]   ;;  %s3360_s3 = inlined_call_operand.hbm [shape: f32[8,128], index: 3, kind: output, shape index: {}]  }
   0x1   :  { %v2430_v0 = vld [vmem:[%s3357_s0 + $0x64] sm:$0xf]  ;;  %v2242_v1 = vld [vmem:[%s3357_s0 + $0x60] sm:$0xf]  ;;  %v2244_v2 = vld [vmem:[%s3357_s0 + $0x68] sm:$0xf0] }
   0x2   :  { %v2431_v3 = vld [vmem:[%s3357_s0 + $0x64] sm:$0xf0]  ;;  %v2247_v4 = vor.u32 %v2430_v0, %v2244_v2  ;;  %v2426_v5 = vld [vmem:[%s3357_s0 + $0x44] sm:$0xf]  ;;  %v2206_v6 = vld [vmem:[%s3357_s0 + $0x40] sm:$0xf] }
   0x3   :  { %v2243_v7 = vor.u32 %v2431_v3, %v2242_v1  ;;  %v2208_v8 = vld [vmem:[%s3357_s0 + $0x48] sm:$0xf0]  ;;  %v2427_v9 = vld [vmem:[%s3357_s0 + $0x44] sm:$0xf0]  ;;  %v2418_v10 = vld [vmem:[%s3357_s0 + $0x4] sm:$0xf] }
   0x4   :  { %v2207_v11 = vor.u32 %v2427_v9, %v2206_v6  ;;  %v2211_v12 = vor.u32 %v2426_v5, %v2208_v8  ;;  %v2126_v13 = vld [vmem:[%s3357_s0] sm:$0xf]  ;;  %v2128_v14 = vld [vmem:[%s3357_s0 + $0x8] sm:$0xf0]  ;;  %v2419_v15 = vld [vmem:[%s3357_s0 + $0x4] sm:$0xf0] }
   0x5   :  { %837 = vxpose.binary.xlu1.c.b16.start [1/4] (short) %v2247_v4, %v2243_v7, 128  ;;  %v2127_v16 = vor.u32 %v2419_v15, %v2126_v13  ;;  %v2131_v17 = vor.u32 %v2418_v10, %v2128_v14 }
   0x6   :  { %582 = vxpose.binary.xlu0.c.b16.start [1/4] (short) %v2211_v12, %v2207_v11, 128 }
   0x7   :  { %53 = vxpose.binary.xlu2.c.b16.start [1/4] (short) %v2131_v17, %v2127_v16, 128 }
   0x8   :  { %8 = vsyncpa [#allocation3], 0  ;;  %v2432_v18 = vld [vmem:[%s3357_s0 + $0x74] sm:$0xf]  ;;  %v2250_v19 = vld [vmem:[%s3357_s0 + $0x70] sm:$0xf] }
   0x9   :  { %v2252_v20 = vld [vmem:[%s3357_s0 + $0x78] sm:$0x30]  ;;  %v2433_v21 = vld [vmem:[%s3357_s0 + $0x74] sm:$0x30]  ;;  %v2428_v22 = vld [vmem:[%s3357_s0 + $0x54] sm:$0xf] }
   0xa   :  { %v2214_v23 = vld [vmem:[%s3357_s0 + $0x50] sm:$0xf]  ;;  %v2216_v24 = vld [vmem:[%s3357_s0 + $0x58] sm:$0x30]  ;;  %v2429_v25 = vld [vmem:[%s3357_s0 + $0x54] sm:$0x30]  ;;  %v2251_v30 = vor.u32 %v2433_v21, %v2250_v19  ;;  %v2255_v31 = vor.u32 %v2432_v18, %v2252_v20 }
   0xb   :  { %v2420_v26 = vld [vmem:[%s3357_s0 + $0x14] sm:$0xf]  ;;  %v2134_v27 = vld [vmem:[%s3357_s0 + $0x10] sm:$0xf]  ;;  %v2136_v28 = vld [vmem:[%s3357_s0 + $0x18] sm:$0x30]  ;;  %v2215_v32 = vor.u32 %v2429_v25, %v2214_v23  ;;  %v2219_v33 = vor.u32 %v2428_v22, %v2216_v24 }
   0xc   :  { %v2421_v29 = vld [vmem:[%s3357_s0 + $0x14] sm:$0x30]  ;;  %v2139_v35 = vor.u32 %v2420_v26, %v2136_v28  ;;  %v2146_v36 = vld [vmem:[%s3358_s1 + $0x8] sm:$0xf]  ;;  %v2417_v37 = vld [vmem:[%s3358_s1 + $0x8] sm:$0x30] }
   0xd   :  { %v2135_v34 = vor.u32 %v2421_v29, %v2134_v27  ;;  %vm137_vm0 = vcmask 1044480   ;;  %vm138_vm1 = vcmask 1045504   ;;  %v2147_v38 = vor.u32 %v2417_v37, %v2146_v36  ;;  %v2416_v43 = vld [vmem:[%s3358_s1] sm:$0xff]  ;;  %v2172_v46 = vld [vmem:[%s3357_s0 + $0x28] sm:$0xf0]  ;;  %s2115_s16 = sshll.u32 %s3360_s3, 4  ;;  %s2116_s16 = int_to_ptr.hbm [resolvable:$true] %s2115_s16 }
   0xe   :  { %v2483_v39 = vmov 65535   ;;  %v2422_v44 = vld [vmem:[%s3357_s0 + $0x24] sm:$0xf]  ;;  %v2170_v45 = vld [vmem:[%s3357_s0 + $0x20] sm:$0xf]  ;;  %vm88_vm2 = vcmask 220160  }
   0xf   :  { %v139_v40 = vsel %vm137_vm0, 4294967295, %v2483_v39  ;;  %v2423_v47 = vld [vmem:[%s3357_s0 + $0x24] sm:$0xf0]  ;;  %v2175_v49 = vor.u32 %v2422_v44, %v2172_v46  ;;  %v2424_v50 = vld [vmem:[%s3357_s0 + $0x34] sm:$0xf]  ;;  %vm2088_vm3 = vcmask 1040384  }
  0x10   :  { %v140_v41 = vsel %vm138_vm1, %v139_v40, 0  ;;  %v2171_v48 = vor.u32 %v2423_v47, %v2170_v45  ;;  %v2178_v51 = vld [vmem:[%s3357_s0 + $0x30] sm:$0xf]  ;;  %v2180_v52 = vld [vmem:[%s3357_s0 + $0x38] sm:$0x30]  ;;  %vm2090_vm4 = vcmask 1041408  }
  0x11   :  { %v142_v42 = vand.u32 %v2147_v38, %v140_v41  ;;  %v2425_v53 = vld [vmem:[%s3357_s0 + $0x34] sm:$0x30]  ;;  %v2183_v55 = vor.u32 %v2424_v50, %v2180_v52  ;;  %v2442_v14 = vld [vmem:[%s3357_s0 + $0xc4] sm:$0xf]  ;;  %v2350_v15 = vld [vmem:[%s3357_s0 + $0xc0] sm:$0xf] }
  0x12   :  { %v2179_v54 = vor.u32 %v2425_v53, %v2178_v51  ;;  %v2352_v16 = vld [vmem:[%s3357_s0 + $0xc8] sm:$0xf0]  ;;  %v2443_v17 = vld [vmem:[%s3357_s0 + $0xc4] sm:$0xf0]  ;;  %v2446_v23 = vld [vmem:[%s3357_s0 + $0xe4] sm:$0xf] }
  0x13   :  { %150 = vmatpush.bf16.msra.mxu0 %v142_v42  ;;  %660 = vmatpush.bf16.msra.mxu2 %v142_v42  ;;  %v2355_v18 = vor.u32 %v2442_v14, %v2352_v16  ;;  %v2351_v19 = vor.u32 %v2443_v17, %v2350_v15  ;;  %v2386_v24 = vld [vmem:[%s3357_s0 + $0xe0] sm:$0xf]  ;;  %v2388_v25 = vld [vmem:[%s3357_s0 + $0xe8] sm:$0xf0]  ;;  %v2447_v27 = vld [vmem:[%s3357_s0 + $0xe4] sm:$0xf0] }
  0x14   :  { %915 = vmatpush.bf16.msra.mxu3 %v142_v42  ;;  %405 = vmatpush.bf16.msra.mxu1 %v142_v42  ;;  %v2391_v28 = vor.u32 %v2446_v23, %v2388_v25  ;;  %v2448_v41 = vld [vmem:[%s3357_s0 + $0xf4] sm:$0xf]  ;;  %v2449_v44 = vld [vmem:[%s3357_s0 + $0xf4] sm:$0x30]  ;;  %v2434_v45 = vld [vmem:[%s3357_s0 + $0x84] sm:$0xf] }
  0x15   :  { %838 = vxpose.binary.xlu1.c.b16.end [2/4] (short) %v2255_v31, %v2251_v30, 128  ;;  %v2387_v30 = vor.u32 %v2447_v27, %v2386_v24  ;;  %v2278_v46 = vld [vmem:[%s3357_s0 + $0x80] sm:$0xf]  ;;  %v2280_v47 = vld [vmem:[%s3357_s0 + $0x88] sm:$0xf0]  ;;  %vm2092_vm5 = vcmask 1042432   ;;  %vm2094_vm6 = vcmask 1043456  }
  0x16   :  { %583 = vxpose.binary.xlu0.c.b16.end [2/4] (short) %v2219_v33, %v2215_v32, 128  ;;  %v2444_v32 = vld [vmem:[%s3357_s0 + $0xd4] sm:$0xf]  ;;  %v2358_v33 = vld [vmem:[%s3357_s0 + $0xd0] sm:$0xf]  ;;  %vm2098_vm7 = vcmask 1046528  }
  0x17   :  { %54 = vxpose.binary.xlu2.c.b16.end [2/4] (short) %v2139_v35, %v2135_v34, 128  ;;  %v2360_v34 = vld [vmem:[%s3357_s0 + $0xd8] sm:$0x30]  ;;  %v2445_v35 = vld [vmem:[%s3357_s0 + $0xd4] sm:$0x30] }
  0x18   :  { %151 = vmatpush.bf16.msra.mxu0 %v2416_v43  ;;  %661 = vmatpush.bf16.msra.mxu2 %v2416_v43  ;;  %v2363_v36 = vor.u32 %v2444_v32, %v2360_v34  ;;  %v2359_v37 = vor.u32 %v2445_v35, %v2358_v33 }
  0x19   :  { %916 = vmatpush.bf16.msra.mxu3 %v2416_v43  ;;  %406 = vmatpush.bf16.msra.mxu1 %v2416_v43 }
  0x1c   :  { %1680 = vmatpush.bf16.msrb.mxu2 %v142_v42  ;;  %1170 = vmatpush.bf16.msrb.mxu0 %v142_v42 }
  0x1d   :  { %1935 = vmatpush.bf16.msrb.mxu3 %v142_v42  ;;  %1425 = vmatpush.bf16.msrb.mxu1 %v142_v42  ;;  %v2394_v42 = vld [vmem:[%s3357_s0 + $0xf0] sm:$0xf] }
  0x1e   :  { %v2395_v50 = vor.u32 %v2449_v44, %v2394_v42 }
  0x20   :  { %1681 = vmatpush.bf16.msrb.mxu2 %v2416_v43  ;;  %1171 = vmatpush.bf16.msrb.mxu0 %v2416_v43 }
  0x21   :  { %1936 = vmatpush.bf16.msrb.mxu3 %v2416_v43  ;;  %1426 = vmatpush.bf16.msrb.mxu1 %v2416_v43  ;;  %v2396_v43 = vld [vmem:[%s3357_s0 + $0xf8] sm:$0x30] }
  0x22   :  { %v2399_v51 = vor.u32 %v2448_v41, %v2396_v43 }
  0x85   :  { %1602 = vxpose.binary.xlu1.c.b16.start [1/4] (short) %v2355_v18, %v2351_v19, 128 }
  0x86   :  { %327 = vxpose.binary.xlu0.c.b16.start [1/4] (short) %v2175_v49, %v2171_v48, 128  ;;  %v2435_v48 = vld [vmem:[%s3357_s0 + $0x84] sm:$0xf0] }
  0x87   :  { %1857 = vxpose.binary.xlu2.c.b16.start [1/4] (short) %v2391_v28, %v2387_v30, 128 }
  0x95   :  { %1603 = vxpose.binary.xlu1.c.b16.end [2/4] (short) %v2363_v36, %v2359_v37, 128 }
  0x96   :  { %328 = vxpose.binary.xlu0.c.b16.end [2/4] (short) %v2183_v55, %v2179_v54, 128  ;;  %v2279_v54 = vor.u32 %v2435_v48, %v2278_v46  ;;  %v2283_v55 = vor.u32 %v2434_v45, %v2280_v47 }
  0x97   :  { %1858 = vxpose.binary.xlu2.c.b16.end [2/4] (short) %v2399_v51, %v2395_v50, 128 }
  0xa8   :  { %v61_v56 = vpop.trf.xlu2 }
  0xa9   :  { %2148 = vmatmul.msk.bf16.vlgmr.msra.gmra.mxu0 %vm88_vm2, %v61_v56 }
  0xb0   :  { %v2613_v57 = vpop.trf.xlu2 }
  0xb1   :  { %v845_v58 = vpop.trf.xlu1 }
  0xb2   :  { %v590_v59 = vpop.trf.xlu0  ;;  %2256 = vmatmul.msk.bf16.vlgmr.msra.gmra.mxu3 %vm88_vm2, %v845_v58 }
  0xb3   :  { %2220 = vmatmul.msk.bf16.vlgmr.msra.gmra.mxu2 %vm88_vm2, %v590_v59 }
  0xb8   :  { %v63_v60 = vpop.trf.xlu2 }
  0xb9   :  { %2149 = vmatmul.msk.bf16.gmra.mxu0 %vm88_vm2, %v63_v60  ;;  %v2618_v61 = vpop.trf.xlu1  ;;  %v2436_v60 = vld [vmem:[%s3357_s0 + $0x94] sm:$0xf] }
  0xba   :  { %v2620_v62 = vpop.trf.xlu0 }
  0xc0   :  { %v2622_v63 = vpop.trf.xlu2 }
  0xc1   :  { %v847_v0 = vpop.trf.xlu1 }
  0xc2   :  { %v592_v1 = vpop.trf.xlu0  ;;  %2257 = vmatmul.msk.bf16.gmra.mxu3 %vm88_vm2, %v847_v0  ;;  %v2286_v0 = vld [vmem:[%s3357_s0 + $0x90] sm:$0xf] }
  0xc3   :  { %2221 = vmatmul.msk.bf16.gmra.mxu2 %vm88_vm2, %v592_v1  ;;  %v2288_v1 = vld [vmem:[%s3357_s0 + $0x98] sm:$0x30] }
  0xc8   :  { %v65_v2 = vpop.trf.xlu2 }
  0xc9   :  { %2150 = vmatmul.msk.bf16.gmra.mxu0 %vm88_vm2, %v65_v2  ;;  %v2627_v3 = vpop.trf.xlu1  ;;  %v2437_v2 = vld [vmem:[%s3357_s0 + $0x94] sm:$0x30] }
  0xca   :  { %v2629_v4 = vpop.trf.xlu0 }
  0xd0   :  { %v2631_v5 = vpop.trf.xlu2 }
  0xd1   :  { %v849_v6 = vpop.trf.xlu1 }
  0xd2   :  { %v594_v7 = vpop.trf.xlu0  ;;  %2258 = vmatmul.msk.bf16.gmra.mxu3 %vm88_vm2, %v849_v6 }
  0xd3   :  { %2222 = vmatmul.msk.bf16.gmra.mxu2 %vm88_vm2, %v594_v7 }
  0xd8   :  { %v67_v8 = vpop.trf.xlu2 }
  0xd9   :  { %2151 = vmatmul.msk.bf16.gmra.mxu0 %vm88_vm2, %v67_v8  ;;  %v2636_v9 = vpop.trf.xlu1 }
  0xda   :  { %v2638_v10 = vpop.trf.xlu0 }
  0xe0   :  { %v2640_v11 = vpop.trf.xlu2 }
  0xe1   :  { %v851_v12 = vpop.trf.xlu1 }
  0xe2   :  { %v596_v13 = vpop.trf.xlu0  ;;  %2259 = vmatmul.msk.bf16.gmra.mxu3 %vm88_vm2, %v851_v12  ;;  %v2287_v12 = vor.u32 %v2437_v2, %v2286_v0 }
  0xe3   :  { %2223 = vmatmul.msk.bf16.gmra.mxu2 %vm88_vm2, %v596_v13  ;;  %v2291_v13 = vor.u32 %v2436_v60, %v2288_v1 }
  0xe8   :  { %v69_v20 = vpop.trf.xlu2 }
  0xe9   :  { %2152 = vmatmul.msk.bf16.gmra.mxu0 %vm88_vm2, %v69_v20  ;;  %v2657_v21 = vpop.trf.xlu1  ;;  %v2753_v20 = vld [vmem:[%s3359_s2] ss:$0 sm:$0xff] }
  0xea   :  { %v2659_v22 = vpop.trf.xlu0 }
  0xf0   :  { %v2670_v26 = vpop.trf.xlu2 }
  0xf1   :  { %v853_v29 = vpop.trf.xlu1 }
  0xf2   :  { %v598_v31 = vpop.trf.xlu0  ;;  %2260 = vmatmul.msk.bf16.gmra.mxu3 %vm88_vm2, %v853_v29 }
  0xf3   :  { %2224 = vmatmul.msk.bf16.gmra.mxu2 %vm88_vm2, %v598_v31 }
  0xf8   :  { %v71_v38 = vpop.trf.xlu2 }
  0xf9   :  { %2153 = vmatmul.msk.bf16.gmra.mxu0 %vm88_vm2, %v71_v38  ;;  %v2690_v39 = vpop.trf.xlu1 }
  0xfa   :  { %v2692_v40 = vpop.trf.xlu0 }
 0x100   :  { %v2718_v49 = vpop.trf.xlu2 }
 0x101   :  { %v855_v52 = vpop.trf.xlu1 }
 0x102   :  { %v600_v53 = vpop.trf.xlu0  ;;  %2261 = vmatmul.msk.bf16.gmra.mxu3 %vm88_vm2, %v855_v52 }
 0x103   :  { %2225 = vmatmul.msk.bf16.gmra.mxu2 %vm88_vm2, %v600_v53 }
 0x106   :  { %1092 = vxpose.binary.xlu0.c.b16.start [1/4] (short) %v2283_v55, %v2279_v54, 128 }
 0x108   :  { %v73_v56 = vpop.trf.xlu2 }
 0x109   :  { %2154 = vmatmul.msk.bf16.gmra.mxu0 %vm88_vm2, %v73_v56  ;;  %v2723_v58 = vpop.trf.xlu1 }
 0x10a   :  { %v2725_v59 = vpop.trf.xlu0 }
 0x110   :  { %v2739_v6 = vpop.trf.xlu2 }
 0x111   :  { %v857_v7 = vpop.trf.xlu1 }
 0x112   :  { %v602_v8 = vpop.trf.xlu0  ;;  %2262 = vmatmul.msk.bf16.gmra.mxu3 %vm88_vm2, %v857_v7 }
 0x113   :  { %2226 = vmatmul.msk.bf16.gmra.mxu2 %vm88_vm2, %v602_v8 }
 0x116   :  { %1093 = vxpose.binary.xlu0.c.b16.end [2/4] (short) %v2291_v13, %v2287_v12, 128 }
 0x118   :  { %v75_v14 = vpop.trf.xlu2 }
 0x119   :  { %2155 = vmatmul.msk.bf16.gmra.mxu0 %vm88_vm2, %v75_v14  ;;  %v2744_v15 = vpop.trf.xlu1 }
 0x11a   :  { %v2746_v16 = vpop.trf.xlu0 }
 0x121   :  { %v859_v17 = vpop.trf.xlu1 }
 0x122   :  { %v604_v18 = vpop.trf.xlu0  ;;  %2263 = vmatmul.msk.bf16.gmra.mxu3 %vm88_vm2, %v859_v17 }
 0x123   :  { %2227 = vmatmul.msk.bf16.gmra.mxu2 %vm88_vm2, %v604_v18 }
 0x126   :  { %v153_v19 = vpop.f32.mrf.mxu0 }
 0x127   :  { %v154_v24 = vadd.f32 %v2753_v20, %v153_v19 }
 0x129   :  { %2156 = vmatmul.msk.bf16.gmra.mxu0 %vm88_vm2, %v2613_v57  ;;  %v233_v27 = vmax.f32 %v154_v24, 0.0 }
 0x12a   :  { %v2757_v23 = vpop.trf.xlu0 }
 0x12e   :  { %v155_v25 = vpop.f32.mrf.mxu0 }
 0x12f   :  { %v156_v28 = vadd.f32 %v2753_v20, %v155_v25 }
 0x131   :  { %v234_v29 = vmax.f32 %v156_v28, 0.0 }
 0x132   :  { %v335_v30 = vpop.trf.xlu0  ;;  %2264 = vmatmul.msk.bf16.gmra.mxu3 %vm88_vm2, %v2618_v61 }
 0x133   :  { %v265_v31 = vadd.f32 %v234_v29, %v233_v27  ;;  %2184 = vmatmul.msk.bf16.vlgmr.msra.gmra.mxu1 %vm88_vm2, %v335_v30  ;;  %2228 = vmatmul.msk.bf16.gmra.mxu2 %vm88_vm2, %v2620_v62 }
 0x135   :  { %v918_v57 = vpop.f32.mrf.mxu3 }
 0x136   :  { %v158_v32 = vpop.f32.mrf.mxu0  ;;  %v663_v33 = vpop.f32.mrf.mxu2  ;;  %v919_v36 = vadd.f32 %v2753_v20, %v918_v57 }
 0x137   :  { %v159_v34 = vadd.f32 %v2753_v20, %v158_v32  ;;  %v664_v38 = vadd.f32 %v2753_v20, %v663_v33 }
 0x138   :  { %v998_v42 = vmax.f32 %v919_v36, 0.0 }
 0x139   :  { %v235_v35 = vmax.f32 %v159_v34, 0.0  ;;  %2157 = vmatmul.msk.bf16.gmra.mxu0 %vm88_vm2, %v2622_v63  ;;  %v743_v48 = vmax.f32 %v664_v38, 0.0 }
 0x13a   :  { %v2770_v37 = vpop.trf.xlu0 }
 0x13b   :  { %v266_v61 = vadd.f32 %v265_v31, %v235_v35 }
 0x13d   :  { %v920_v41 = vpop.f32.mrf.mxu3 }
 0x13e   :  { %v160_v43 = vpop.f32.mrf.mxu0  ;;  %v665_v62 = vpop.f32.mrf.mxu2  ;;  %v921_v44 = vadd.f32 %v2753_v20, %v920_v41 }
 0x13f   :  { %v161_v45 = vadd.f32 %v2753_v20, %v160_v43  ;;  %v666_v46 = vadd.f32 %v2753_v20, %v665_v62 }
 0x140   :  { %v999_v47 = vmax.f32 %v921_v44, 0.0 }
 0x141   :  { %v236_v63 = vmax.f32 %v161_v45, 0.0  ;;  %v744_v50 = vmax.f32 %v666_v46, 0.0 }
 0x142   :  { %v1030_v51 = vadd.f32 %v999_v47, %v998_v42  ;;  %v337_v52 = vpop.trf.xlu0  ;;  %2265 = vmatmul.msk.bf16.gmra.mxu3 %vm88_vm2, %v2627_v3 }
 0x143   :  { %v267_v53 = vadd.f32 %v266_v61, %v236_v63  ;;  %v775_v54 = vadd.f32 %v744_v50, %v743_v48  ;;  %2185 = vmatmul.msk.bf16.gmra.mxu1 %vm88_vm2, %v337_v52  ;;  %2229 = vmatmul.msk.bf16.gmra.mxu2 %vm88_vm2, %v2629_v4 }
 0x145   :  { %v923_v55 = vpop.f32.mrf.mxu3 }
 0x146   :  { %v163_v56 = vpop.f32.mrf.mxu0  ;;  %v668_v60 = vpop.f32.mrf.mxu2  ;;  %v924_v0 = vadd.f32 %v2753_v20, %v923_v55 }
 0x147   :  { %v164_v1 = vadd.f32 %v2753_v20, %v163_v56  ;;  %v669_v2 = vadd.f32 %v2753_v20, %v668_v60  ;;  %v2438_v60 = vld [vmem:[%s3357_s0 + $0xa4] sm:$0xf] }
 0x148   :  { %v1000_v7 = vmax.f32 %v924_v0, 0.0  ;;  %v2314_v0 = vld [vmem:[%s3357_s0 + $0xa0] sm:$0xf] }
 0x149   :  { %v237_v8 = vmax.f32 %v164_v1, 0.0  ;;  %v745_v12 = vmax.f32 %v669_v2, 0.0  ;;  %2158 = vmatmul.msk.bf16.gmra.mxu0 %vm88_vm2, %v2631_v5  ;;  %v2316_v1 = vld [vmem:[%s3357_s0 + $0xa8] sm:$0xf0]  ;;  %v2439_v2 = vld [vmem:[%s3357_s0 + $0xa4] sm:$0xf0] }
 0x14a   :  { %v1031_v3 = vadd.f32 %v1030_v51, %v1000_v7  ;;  %v2786_v13 = vpop.trf.xlu0  ;;  %v2319_v7 = vor.u32 %v2438_v60, %v2316_v1 }
 0x14b   :  { %v268_v14 = vadd.f32 %v267_v53, %v237_v8  ;;  %v776_v4 = vadd.f32 %v775_v54, %v745_v12 }
 0x14d   :  { %v925_v17 = vpop.f32.mrf.mxu3 }
 0x14e   :  { %v165_v18 = vpop.f32.mrf.mxu0  ;;  %v670_v19 = vpop.f32.mrf.mxu2  ;;  %v926_v24 = vadd.f32 %v2753_v20, %v925_v17 }
 0x14f   :  { %v166_v25 = vadd.f32 %v2753_v20, %v165_v18  ;;  %v671_v27 = vadd.f32 %v2753_v20, %v670_v19 }
 0x150   :  { %v1001_v28 = vmax.f32 %v926_v24, 0.0 }
 0x151   :  { %v238_v29 = vmax.f32 %v166_v25, 0.0  ;;  %v746_v30 = vmax.f32 %v671_v27, 0.0 }
 0x152   :  { %v1032_v31 = vadd.f32 %v1031_v3, %v1001_v28  ;;  %v339_v57 = vpop.trf.xlu0  ;;  %2266 = vmatmul.msk.bf16.gmra.mxu3 %vm88_vm2, %v2636_v9  ;;  %v2315_v3 = vor.u32 %v2439_v2, %v2314_v0 }
 0x153   :  { %v269_v5 = vadd.f32 %v268_v14, %v238_v29  ;;  %v777_v32 = vadd.f32 %v776_v4, %v746_v30  ;;  %2186 = vmatmul.msk.bf16.gmra.mxu1 %vm88_vm2, %v339_v57  ;;  %2230 = vmatmul.msk.bf16.gmra.mxu2 %vm88_vm2, %v2638_v10 }
 0x154   :  { %1347 = vxpose.binary.xlu1.c.b16.start [1/4] (short) %v2319_v7, %v2315_v3, 128 }
 0x155   :  { %v928_v33 = vpop.f32.mrf.mxu3 }
 0x156   :  { %v168_v34 = vpop.f32.mrf.mxu0  ;;  %v673_v35 = vpop.f32.mrf.mxu2  ;;  %v929_v36 = vadd.f32 %v2753_v20, %v928_v33 }
 0x157   :  { %v169_v61 = vadd.f32 %v2753_v20, %v168_v34  ;;  %v674_v38 = vadd.f32 %v2753_v20, %v673_v35 }
 0x158   :  { %v1002_v41 = vmax.f32 %v929_v36, 0.0 }
 0x159   :  { %v239_v42 = vmax.f32 %v169_v61, 0.0  ;;  %v747_v43 = vmax.f32 %v674_v38, 0.0  ;;  %2159 = vmatmul.msk.bf16.gmra.mxu0 %vm88_vm2, %v2640_v11  ;;  %v2440_v38 = vld [vmem:[%s3357_s0 + $0xb4] sm:$0xf] }
 0x15a   :  { %v1033_v9 = vadd.f32 %v1032_v31, %v1002_v41  ;;  %v2801_v62 = vpop.trf.xlu0  ;;  %v2322_v41 = vld [vmem:[%s3357_s0 + $0xb0] sm:$0xf] }
 0x15b   :  { %v270_v44 = vadd.f32 %v269_v5, %v239_v42  ;;  %v778_v10 = vadd.f32 %v777_v32, %v747_v43  ;;  %v2324_v42 = vld [vmem:[%s3357_s0 + $0xb8] sm:$0x30]  ;;  %v2441_v43 = vld [vmem:[%s3357_s0 + $0xb4] sm:$0x30] }
 0x15d   :  { %v930_v45 = vpop.f32.mrf.mxu3 }
 0x15e   :  { %v170_v46 = vpop.f32.mrf.mxu0  ;;  %v675_v47 = vpop.f32.mrf.mxu2  ;;  %v931_v48 = vadd.f32 %v2753_v20, %v930_v45  ;;  %v2323_v45 = vor.u32 %v2441_v43, %v2322_v41 }
 0x15f   :  { %v171_v63 = vadd.f32 %v2753_v20, %v170_v46  ;;  %v676_v50 = vadd.f32 %v2753_v20, %v675_v47 }
 0x160   :  { %v1003_v51 = vmax.f32 %v931_v48, 0.0 }
 0x161   :  { %v240_v52 = vmax.f32 %v171_v63, 0.0  ;;  %v748_v53 = vmax.f32 %v676_v50, 0.0 }
 0x162   :  { %v1034_v54 = vadd.f32 %v1033_v9, %v1003_v51  ;;  %v341_v55 = vpop.trf.xlu0  ;;  %2267 = vmatmul.msk.bf16.gmra.mxu3 %vm88_vm2, %v2657_v21  ;;  %v2327_v9 = vor.u32 %v2440_v38, %v2324_v42 }
 0x163   :  { %v271_v11 = vadd.f32 %v270_v44, %v240_v52  ;;  %v779_v56 = vadd.f32 %v778_v10, %v748_v53  ;;  %2187 = vmatmul.msk.bf16.gmra.mxu1 %vm88_vm2, %v341_v55  ;;  %2231 = vmatmul.msk.bf16.gmra.mxu2 %vm88_vm2, %v2659_v22 }
 0x164   :  { %1348 = vxpose.binary.xlu1.c.b16.end [2/4] (short) %v2327_v9, %v2323_v45, 128 }
 0x165   :  { %v933_v21 = vpop.f32.mrf.mxu3 }
 0x166   :  { %v173_v8 = vpop.f32.mrf.mxu0  ;;  %v678_v22 = vpop.f32.mrf.mxu2  ;;  %v934_v12 = vadd.f32 %v2753_v20, %v933_v21 }
 0x167   :  { %v174_v14 = vadd.f32 %v2753_v20, %v173_v8  ;;  %v679_v4 = vadd.f32 %v2753_v20, %v678_v22 }
 0x168   :  { %v1004_v17 = vmax.f32 %v934_v12, 0.0 }
 0x169   :  { %v241_v18 = vmax.f32 %v174_v14, 0.0  ;;  %v749_v19 = vmax.f32 %v679_v4, 0.0  ;;  %2160 = vmatmul.msk.bf16.gmra.mxu0 %vm88_vm2, %v2670_v26 }
 0x16a   :  { %v1035_v24 = vadd.f32 %v1034_v54, %v1004_v17  ;;  %v2828_v25 = vpop.trf.xlu0 }
 0x16b   :  { %v272_v27 = vadd.f32 %v271_v11, %v241_v18  ;;  %v780_v28 = vadd.f32 %v779_v56, %v749_v19 }
 0x16d   :  { %v935_v29 = vpop.f32.mrf.mxu3 }
 0x16e   :  { %v175_v30 = vpop.f32.mrf.mxu0  ;;  %v680_v31 = vpop.f32.mrf.mxu2  ;;  %v936_v57 = vadd.f32 %v2753_v20, %v935_v29 }
 0x16f   :  { %v176_v5 = vadd.f32 %v2753_v20, %v175_v30  ;;  %v681_v32 = vadd.f32 %v2753_v20, %v680_v31 }
 0x170   :  { %v1005_v33 = vmax.f32 %v936_v57, 0.0  ;;  %v860_v57 = vpop.trf.xlu1 }
 0x171   :  { %v750_v34 = vmax.f32 %v681_v32, 0.0  ;;  %v242_v26 = vmax.f32 %v176_v5, 0.0  ;;  %v76_v32 = vpop.trf.xlu2 }
 0x172   :  { %v1036_v35 = vadd.f32 %v1035_v24, %v1005_v33  ;;  %v343_v36 = vpop.trf.xlu0  ;;  %2268 = vmatmul.msk.bf16.gmra.mxu3 %vm88_vm2, %v2690_v39 }
 0x173   :  { %v781_v61 = vadd.f32 %v780_v28, %v750_v34  ;;  %2188 = vmatmul.msk.bf16.gmra.mxu1 %vm88_vm2, %v343_v36  ;;  %2232 = vmatmul.msk.bf16.gmra.mxu2 %vm88_vm2, %v2692_v40  ;;  %v273_v46 = vadd.f32 %v272_v27, %v242_v26 }
 0x175   :  { %v938_v39 = vpop.f32.mrf.mxu3 }
 0x176   :  { %v178_v44 = vpop.f32.mrf.mxu0  ;;  %v683_v40 = vpop.f32.mrf.mxu2  ;;  %v939_v10 = vadd.f32 %v2753_v20, %v938_v39 }
 0x177   :  { %v179_v47 = vadd.f32 %v2753_v20, %v178_v44  ;;  %v684_v48 = vadd.f32 %v2753_v20, %v683_v40 }
 0x178   :  { %v1006_v63 = vmax.f32 %v939_v10, 0.0  ;;  %v2880_v43 = vpop.trf.xlu1 }
 0x179   :  { %v243_v50 = vmax.f32 %v179_v47, 0.0  ;;  %v751_v51 = vmax.f32 %v684_v48, 0.0  ;;  %2161 = vmatmul.msk.bf16.gmra.mxu0 %vm88_vm2, %v2718_v49  ;;  %v1865_v44 = vpop.trf.xlu2 }
 0x17a   :  { %v1037_v52 = vadd.f32 %v1036_v35, %v1006_v63  ;;  %v2855_v53 = vpop.trf.xlu0 }
 0x17b   :  { %v274_v54 = vadd.f32 %v273_v46, %v243_v50  ;;  %v782_v55 = vadd.f32 %v781_v61, %v751_v51 }
 0x17d   :  { %v940_v11 = vpop.f32.mrf.mxu3 }
 0x17e   :  { %v180_v56 = vpop.f32.mrf.mxu0  ;;  %v685_v60 = vpop.f32.mrf.mxu2  ;;  %v941_v0 = vadd.f32 %v2753_v20, %v940_v11 }
 0x17f   :  { %v181_v1 = vadd.f32 %v2753_v20, %v180_v56  ;;  %v686_v21 = vadd.f32 %v2753_v20, %v685_v60 }
 0x180   :  { %v1007_v2 = vmax.f32 %v941_v0, 0.0 }
 0x181   :  { %v752_v7 = vmax.f32 %v686_v21, 0.0  ;;  %v244_v49 = vmax.f32 %v181_v1, 0.0  ;;  %v2890_v56 = vpop.trf.xlu2 }
 0x182   :  { %v1038_v8 = vadd.f32 %v1037_v52, %v1007_v2  ;;  %v345_v22 = vpop.trf.xlu0  ;;  %2269 = vmatmul.msk.bf16.gmra.mxu3 %vm88_vm2, %v2723_v58 }
 0x183   :  { %v783_v12 = vadd.f32 %v782_v55, %v752_v7  ;;  %2189 = vmatmul.msk.bf16.gmra.mxu1 %vm88_vm2, %v345_v22  ;;  %2233 = vmatmul.msk.bf16.gmra.mxu2 %vm88_vm2, %v2725_v59  ;;  %v275_v18 = vadd.f32 %v274_v54, %v244_v49  ;;  %v2888_v55 = vpop.trf.xlu1 }
 0x185   :  { %v943_v3 = vpop.f32.mrf.mxu3 }
 0x186   :  { %v183_v14 = vpop.f32.mrf.mxu0  ;;  %v688_v4 = vpop.f32.mrf.mxu2  ;;  %v944_v17 = vadd.f32 %v2753_v20, %v943_v3 }
 0x187   :  { %v184_v19 = vadd.f32 %v2753_v20, %v183_v14  ;;  %v689_v24 = vadd.f32 %v2753_v20, %v688_v4 }
 0x188   :  { %v1008_v27 = vmax.f32 %v944_v17, 0.0 }
 0x189   :  { %v245_v28 = vmax.f32 %v184_v19, 0.0  ;;  %v753_v58 = vmax.f32 %v689_v24, 0.0  ;;  %2162 = vmatmul.msk.bf16.gmra.mxu0 %vm88_vm2, %v2739_v6 }
 0x18a   :  { %v1039_v29 = vadd.f32 %v1038_v8, %v1008_v27  ;;  %v2870_v30 = vpop.trf.xlu0 }
 0x18b   :  { %v276_v59 = vadd.f32 %v275_v18, %v245_v28  ;;  %v784_v31 = vadd.f32 %v783_v12, %v753_v58  ;;  %v2899_v14 = vpop.trf.xlu1  ;;  %v1867_v58 = vpop.trf.xlu2 }
 0x18d   :  { %v945_v5 = vpop.f32.mrf.mxu3 }
 0x18e   :  { %v185_v33 = vpop.f32.mrf.mxu0  ;;  %v690_v34 = vpop.f32.mrf.mxu2  ;;  %v946_v35 = vadd.f32 %v2753_v20, %v945_v5 }
 0x18f   :  { %v186_v36 = vadd.f32 %v2753_v20, %v185_v33  ;;  %v691_v26 = vadd.f32 %v2753_v20, %v690_v34 }
 0x190   :  { %v1009_v61 = vmax.f32 %v946_v35, 0.0 }
 0x191   :  { %v754_v38 = vmax.f32 %v691_v26, 0.0  ;;  %v246_v42 = vmax.f32 %v186_v36, 0.0 }
 0x192   :  { %v1040_v41 = vadd.f32 %v1039_v29, %v1009_v61  ;;  %v347_v6 = vpop.trf.xlu0  ;;  %2270 = vmatmul.msk.bf16.gmra.mxu3 %vm88_vm2, %v2744_v15 }
 0x193   :  { %v785_v39 = vadd.f32 %v784_v31, %v754_v38  ;;  %2190 = vmatmul.msk.bf16.gmra.mxu1 %vm88_vm2, %v347_v6  ;;  %2234 = vmatmul.msk.bf16.gmra.mxu2 %vm88_vm2, %v2746_v16  ;;  %v277_v46 = vadd.f32 %v276_v59, %v246_v42  ;;  %v2906_v33 = vpop.trf.xlu1 }
 0x195   :  { %v948_v9 = vpop.f32.mrf.mxu3 }
 0x196   :  { %v188_v40 = vpop.f32.mrf.mxu0  ;;  %v693_v10 = vpop.f32.mrf.mxu2  ;;  %v949_v45 = vadd.f32 %v2753_v20, %v948_v9 }
 0x197   :  { %v189_v47 = vadd.f32 %v2753_v20, %v188_v40  ;;  %v694_v15 = vadd.f32 %v2753_v20, %v693_v10 }
 0x198   :  { %v1010_v48 = vmax.f32 %v949_v45, 0.0 }
 0x199   :  { %v247_v63 = vmax.f32 %v189_v47, 0.0  ;;  %v755_v50 = vmax.f32 %v694_v15, 0.0  ;;  %2163 = vmatmul.msk.bf16.gmra.mxu0 %vm88_vm2, %v76_v32 }
 0x19a   :  { %v1041_v51 = vadd.f32 %v1040_v41, %v1010_v48  ;;  %v2886_v16 = vpop.trf.xlu0 }
 0x19b   :  { %v278_v52 = vadd.f32 %v277_v46, %v247_v63  ;;  %v786_v54 = vadd.f32 %v785_v39, %v755_v50  ;;  %v2911_v39 = vpop.trf.xlu2  ;;  %v2917_v46 = vpop.trf.xlu1 }
 0x19d   :  { %v950_v11 = vpop.f32.mrf.mxu3 }
 0x19e   :  { %v190_v60 = vpop.f32.mrf.mxu0  ;;  %v695_v0 = vpop.f32.mrf.mxu2  ;;  %v951_v1 = vadd.f32 %v2753_v20, %v950_v11 }
 0x19f   :  { %v191_v21 = vadd.f32 %v2753_v20, %v190_v60  ;;  %v696_v2 = vadd.f32 %v2753_v20, %v695_v0 }
 0x1a0   :  { %v1011_v7 = vmax.f32 %v951_v1, 0.0 }
 0x1a1   :  { %v756_v8 = vmax.f32 %v696_v2, 0.0  ;;  %v248_v12 = vmax.f32 %v191_v21, 0.0 }
 0x1a2   :  { %v1042_v22 = vadd.f32 %v1041_v51, %v1011_v7  ;;  %v349_v49 = vpop.trf.xlu0  ;;  %2271 = vmatmul.msk.bf16.gmra.mxu3 %vm88_vm2, %v860_v57 }
 0x1a3   :  { %v787_v3 = vadd.f32 %v786_v54, %v756_v8  ;;  %2191 = vmatmul.msk.bf16.gmra.mxu1 %vm88_vm2, %v349_v49  ;;  %2235 = vmatmul.msk.bf16.gmra.mxu2 %vm88_vm2, %v2757_v23  ;;  %v279_v24 = vadd.f32 %v278_v52, %v248_v12  ;;  %v2928_v49 = vpop.trf.xlu1 }
 0x1a5   :  { %v953_v4 = vpop.f32.mrf.mxu3 }
 0x1a6   :  { %v193_v17 = vpop.f32.mrf.mxu0  ;;  %v698_v18 = vpop.f32.mrf.mxu2  ;;  %v954_v19 = vadd.f32 %v2753_v20, %v953_v4 }
 0x1a7   :  { %v194_v27 = vadd.f32 %v2753_v20, %v193_v17  ;;  %v699_v28 = vadd.f32 %v2753_v20, %v698_v18 }
 0x1a8   :  { %v1012_v29 = vmax.f32 %v954_v19, 0.0 }
 0x1a9   :  { %v249_v59 = vmax.f32 %v194_v27, 0.0  ;;  %v757_v31 = vmax.f32 %v699_v28, 0.0 }
 0x1aa   :  { %v1043_v57 = vadd.f32 %v1042_v22, %v1012_v29  ;;  %v2904_v5 = vpop.trf.xlu0  ;;  %v1869_v22 = vpop.trf.xlu2 }
 0x1ab   :  { %v280_v23 = vadd.f32 %v279_v24, %v249_v59  ;;  %v788_v32 = vadd.f32 %v787_v3, %v757_v31 }
 0x1ad   :  { %v955_v34 = vpop.f32.mrf.mxu3 }
 0x1ae   :  { %v195_v35 = vpop.f32.mrf.mxu0  ;;  %v700_v36 = vpop.f32.mrf.mxu2  ;;  %v956_v26 = vadd.f32 %v2753_v20, %v955_v34 }
 0x1af   :  { %v196_v61 = vadd.f32 %v2753_v20, %v195_v35  ;;  %v701_v38 = vadd.f32 %v2753_v20, %v700_v36  ;;  %v2938_v34 = vpop.trf.xlu1 }
 0x1b0   :  { %v1013_v41 = vmax.f32 %v956_v26, 0.0  ;;  %v408_v6 = vpop.f32.mrf.mxu1 }
 0x1b1   :  { %v758_v42 = vmax.f32 %v701_v38, 0.0  ;;  %v250_v10 = vmax.f32 %v196_v61, 0.0 }
 0x1b2   :  { %v1044_v9 = vadd.f32 %v1043_v57, %v1013_v41  ;;  %v1100_v40 = vpop.trf.xlu0  ;;  %2400 = vmatmul.msk.bf16.vlgmr.msrb.gmra.mxu3 %vm88_vm2, %v1865_v44  ;;  %v409_v44 = vadd.f32 %v2753_v20, %v408_v6  ;;  %v2942_v61 = vpop.trf.xlu2 }
 0x1b3   :  { %v789_v45 = vadd.f32 %v788_v32, %v758_v42  ;;  %2192 = vmatmul.msk.bf16.gmra.mxu1 %vm88_vm2, %v2770_v37  ;;  %2292 = vmatmul.msk.bf16.vlgmr.msrb.gmra.mxu0 %vm88_vm2, %v1100_v40  ;;  %v281_v50 = vadd.f32 %v280_v23, %v250_v10 }
 0x1b4   :  { %2364 = vmatmul.msk.bf16.vlgmr.msrb.gmra.mxu2 %vm88_vm2, %v2880_v43  ;;  %v488_v21 = vmax.f32 %v409_v44, 0.0 }
 0x1b5   :  { %v958_v47 = vpop.f32.mrf.mxu3 }
 0x1b6   :  { %v198_v15 = vpop.f32.mrf.mxu0  ;;  %v703_v48 = vpop.f32.mrf.mxu2  ;;  %v959_v63 = vadd.f32 %v2753_v20, %v958_v47 }
 0x1b7   :  { %v199_v51 = vadd.f32 %v2753_v20, %v198_v15  ;;  %v704_v52 = vadd.f32 %v2753_v20, %v703_v48  ;;  %v2950_v44 = vpop.trf.xlu1 }
 0x1b8   :  { %v1014_v37 = vmax.f32 %v959_v63, 0.0  ;;  %v410_v54 = vpop.f32.mrf.mxu1 }
 0x1b9   :  { %v251_v11 = vmax.f32 %v199_v51, 0.0  ;;  %v759_v60 = vmax.f32 %v704_v52, 0.0  ;;  %v411_v0 = vadd.f32 %v2753_v20, %v410_v54 }
 0x1ba   :  { %v1045_v1 = vadd.f32 %v1044_v9, %v1014_v37  ;;  %v2926_v43 = vpop.trf.xlu0 }
 0x1bb   :  { %v282_v2 = vadd.f32 %v281_v50, %v251_v11  ;;  %v790_v7 = vadd.f32 %v789_v45, %v759_v60  ;;  %v489_v8 = vmax.f32 %v411_v0, 0.0  ;;  %v1871_v0 = vpop.trf.xlu2 }
 0x1bd   :  { %v520_v12 = vadd.f32 %v489_v8, %v488_v21  ;;  %v960_v3 = vpop.f32.mrf.mxu3 }
 0x1be   :  { %v200_v4 = vpop.f32.mrf.mxu0  ;;  %v705_v17 = vpop.f32.mrf.mxu2  ;;  %v961_v18 = vadd.f32 %v2753_v20, %v960_v3 }
 0x1bf   :  { %v706_v19 = vadd.f32 %v2753_v20, %v705_v17  ;;  %v201_v28 = vadd.f32 %v2753_v20, %v200_v4 }
 0x1c0   :  { %v1015_v24 = vmax.f32 %v961_v18, 0.0  ;;  %v413_v27 = vpop.f32.mrf.mxu1  ;;  %v2960_v18 = vpop.trf.xlu1 }
 0x1c1   :  { %v760_v29 = vmax.f32 %v706_v19, 0.0  ;;  %v414_v59 = vadd.f32 %v2753_v20, %v413_v27  ;;  %v252_v35 = vmax.f32 %v201_v28, 0.0 }
 0x1c2   :  { %v1046_v31 = vadd.f32 %v1045_v1, %v1015_v24  ;;  %v1102_v57 = vpop.trf.xlu0  ;;  %2401 = vmatmul.msk.bf16.gmra.mxu3 %vm88_vm2, %v1867_v58 }
 0x1c3   :  { %v791_v23 = vadd.f32 %v790_v7, %v760_v29  ;;  %v490_v32 = vmax.f32 %v414_v59, 0.0  ;;  %2193 = vmatmul.msk.bf16.gmra.mxu1 %vm88_vm2, %v2786_v13  ;;  %2293 = vmatmul.msk.bf16.gmra.mxu0 %vm88_vm2, %v1102_v57  ;;  %v283_v40 = vadd.f32 %v282_v2, %v252_v35 }
 0x1c4   :  { %2365 = vmatmul.msk.bf16.gmra.mxu2 %vm88_vm2, %v2899_v14 }
 0x1c5   :  { %v521_v36 = vadd.f32 %v520_v12, %v490_v32  ;;  %v963_v26 = vpop.f32.mrf.mxu3 }
 0x1c6   :  { %v203_v38 = vpop.f32.mrf.mxu0  ;;  %v708_v41 = vpop.f32.mrf.mxu2  ;;  %v964_v58 = vadd.f32 %v2753_v20, %v963_v26 }
 0x1c7   :  { %v204_v6 = vadd.f32 %v2753_v20, %v203_v38  ;;  %v709_v13 = vadd.f32 %v2753_v20, %v708_v41  ;;  %v2968_v26 = vpop.trf.xlu2 }
 0x1c8   :  { %v1016_v42 = vmax.f32 %v964_v58, 0.0  ;;  %v415_v9 = vpop.f32.mrf.mxu1 }
 0x1c9   :  { %v253_v10 = vmax.f32 %v204_v6, 0.0  ;;  %v761_v45 = vmax.f32 %v709_v13, 0.0  ;;  %v416_v14 = vadd.f32 %v2753_v20, %v415_v9  ;;  %v2972_v13 = vpop.trf.xlu1 }
 0x1ca   :  { %v1047_v47 = vadd.f32 %v1046_v31, %v1016_v42  ;;  %v2948_v15 = vpop.trf.xlu0 }
 0x1cb   :  { %v284_v48 = vadd.f32 %v283_v40, %v253_v10  ;;  %v792_v63 = vadd.f32 %v791_v23, %v761_v45  ;;  %v491_v50 = vmax.f32 %v416_v14, 0.0 }
 0x1cd   :  { %v522_v51 = vadd.f32 %v521_v36, %v491_v50  ;;  %v965_v52 = vpop.f32.mrf.mxu3 }
 0x1ce   :  { %v205_v37 = vpop.f32.mrf.mxu0  ;;  %v710_v54 = vpop.f32.mrf.mxu2  ;;  %v966_v11 = vadd.f32 %v2753_v20, %v965_v52 }
 0x1cf   :  { %v711_v60 = vadd.f32 %v2753_v20, %v710_v54  ;;  %v206_v2 = vadd.f32 %v2753_v20, %v205_v37 }
 0x1d0   :  { %v1017_v1 = vmax.f32 %v966_v11, 0.0  ;;  %v418_v21 = vpop.f32.mrf.mxu1 }
 0x1d1   :  { %v762_v7 = vmax.f32 %v711_v60, 0.0  ;;  %v419_v8 = vadd.f32 %v2753_v20, %v418_v21  ;;  %v254_v19 = vmax.f32 %v206_v2, 0.0  ;;  %v1873_v60 = vpop.trf.xlu2 }
 0x1d2   :  { %v1048_v12 = vadd.f32 %v1047_v47, %v1017_v1  ;;  %v1104_v3 = vpop.trf.xlu0  ;;  %2402 = vmatmul.msk.bf16.gmra.mxu3 %vm88_vm2, %v1869_v22  ;;  %v2982_v1 = vpop.trf.xlu1 }
 0x1d3   :  { %v793_v4 = vadd.f32 %v792_v63, %v762_v7  ;;  %v492_v17 = vmax.f32 %v419_v8, 0.0  ;;  %2194 = vmatmul.msk.bf16.gmra.mxu1 %vm88_vm2, %v2801_v62  ;;  %2294 = vmatmul.msk.bf16.gmra.mxu0 %vm88_vm2, %v1104_v3  ;;  %v285_v23 = vadd.f32 %v284_v48, %v254_v19 }
 0x1d4   :  { %2366 = vmatmul.msk.bf16.gmra.mxu2 %vm88_vm2, %v2917_v46 }
 0x1d5   :  { %v523_v24 = vadd.f32 %v522_v51, %v492_v17  ;;  %v968_v27 = vpop.f32.mrf.mxu3 }
 0x1d6   :  { %v208_v28 = vpop.f32.mrf.mxu0  ;;  %v713_v29 = vpop.f32.mrf.mxu2  ;;  %v969_v59 = vadd.f32 %v2753_v20, %v968_v27 }
 0x1d7   :  { %v209_v22 = vadd.f32 %v2753_v20, %v208_v28  ;;  %v714_v31 = vadd.f32 %v2753_v20, %v713_v29 }
 0x1d8   :  { %v1018_v57 = vmax.f32 %v969_v59, 0.0  ;;  %v420_v62 = vpop.f32.mrf.mxu1 }
 0x1d9   :  { %v255_v32 = vmax.f32 %v209_v22, 0.0  ;;  %v763_v35 = vmax.f32 %v714_v31, 0.0  ;;  %v421_v36 = vadd.f32 %v2753_v20, %v420_v62 }
 0x1da   :  { %v1049_v46 = vadd.f32 %v1048_v12, %v1018_v57  ;;  %v2970_v38 = vpop.trf.xlu0  ;;  %v2992_v57 = vpop.trf.xlu1 }
 0x1db   :  { %v286_v41 = vadd.f32 %v285_v23, %v255_v32  ;;  %v794_v58 = vadd.f32 %v793_v4, %v763_v35  ;;  %v493_v6 = vmax.f32 %v421_v36, 0.0  ;;  %v2994_v32 = vpop.trf.xlu2 }
 0x1dd   :  { %v524_v42 = vadd.f32 %v523_v24, %v493_v6  ;;  %v970_v9 = vpop.f32.mrf.mxu3 }
 0x1de   :  { %v210_v40 = vpop.f32.mrf.mxu0  ;;  %v715_v10 = vpop.f32.mrf.mxu2  ;;  %v971_v45 = vadd.f32 %v2753_v20, %v970_v9 }
 0x1df   :  { %v716_v14 = vadd.f32 %v2753_v20, %v715_v10  ;;  %v211_v63 = vadd.f32 %v2753_v20, %v210_v40 }
 0x1e0   :  { %v1019_v47 = vmax.f32 %v971_v45, 0.0  ;;  %v423_v48 = vpop.f32.mrf.mxu1 }
 0x1e1   :  { %v764_v50 = vmax.f32 %v716_v14, 0.0  ;;  %v424_v51 = vadd.f32 %v2753_v20, %v423_v48  ;;  %v256_v21 = vmax.f32 %v211_v63, 0.0 }
 0x1e2   :  { %v1050_v52 = vadd.f32 %v1049_v46, %v1019_v47  ;;  %v1106_v37 = vpop.trf.xlu0  ;;  %2403 = vmatmul.msk.bf16.gmra.mxu3 %vm88_vm2, %v1871_v0  ;;  %v3004_v48 = vpop.trf.xlu1 }
 0x1e3   :  { %v795_v54 = vadd.f32 %v794_v58, %v764_v50  ;;  %v494_v11 = vmax.f32 %v424_v51, 0.0  ;;  %2195 = vmatmul.msk.bf16.gmra.mxu1 %vm88_vm2, %v2828_v25  ;;  %2295 = vmatmul.msk.bf16.gmra.mxu0 %vm88_vm2, %v1106_v37  ;;  %v287_v19 = vadd.f32 %v286_v41, %v256_v21  ;;  %v1875_v21 = vpop.trf.xlu2 }
 0x1e4   :  { %2367 = vmatmul.msk.bf16.gmra.mxu2 %vm88_vm2, %v2938_v34 }
 0x1e5   :  { %v525_v2 = vadd.f32 %v524_v42, %v494_v11  ;;  %v973_v7 = vpop.f32.mrf.mxu3 }
 0x1e6   :  { %v213_v8 = vpop.f32.mrf.mxu0  ;;  %v718_v12 = vpop.f32.mrf.mxu2  ;;  %v974_v0 = vadd.f32 %v2753_v20, %v973_v7 }
 0x1e7   :  { %v214_v3 = vadd.f32 %v2753_v20, %v213_v8  ;;  %v719_v4 = vadd.f32 %v2753_v20, %v718_v12 }
 0x1e8   :  { %v1020_v25 = vmax.f32 %v974_v0, 0.0  ;;  %v425_v17 = vpop.f32.mrf.mxu1 }
 0x1e9   :  { %v257_v24 = vmax.f32 %v214_v3, 0.0  ;;  %v765_v27 = vmax.f32 %v719_v4, 0.0  ;;  %v426_v28 = vadd.f32 %v2753_v20, %v425_v17 }
 0x1ea   :  { %v1051_v29 = vadd.f32 %v1050_v52, %v1020_v25  ;;  %v2990_v34 = vpop.trf.xlu0 }
 0x1eb   :  { %v288_v59 = vadd.f32 %v287_v19, %v257_v24  ;;  %v796_v22 = vadd.f32 %v795_v54, %v765_v27  ;;  %v495_v31 = vmax.f32 %v426_v28, 0.0  ;;  %v3014_v19 = vpop.trf.xlu1 }
 0x1ed   :  { %v526_v62 = vadd.f32 %v525_v2, %v495_v31  ;;  %v975_v23 = vpop.f32.mrf.mxu3 }
 0x1ee   :  { %v215_v35 = vpop.f32.mrf.mxu0  ;;  %v720_v36 = vpop.f32.mrf.mxu2  ;;  %v976_v46 = vadd.f32 %v2753_v20, %v975_v23 }
 0x1ef   :  { %v721_v41 = vadd.f32 %v2753_v20, %v720_v36  ;;  %v216_v42 = vadd.f32 %v2753_v20, %v215_v35 }
 0x1f0   :  { %v1021_v58 = vmax.f32 %v976_v46, 0.0  ;;  %v428_v6 = vpop.f32.mrf.mxu1  ;;  %v3020_v46 = vpop.trf.xlu2 }
 0x1f1   :  { %v766_v9 = vmax.f32 %v721_v41, 0.0  ;;  %v429_v40 = vadd.f32 %v2753_v20, %v428_v6  ;;  %v258_v63 = vmax.f32 %v216_v42, 0.0 }
 0x1f2   :  { %v1052_v10 = vadd.f32 %v1051_v29, %v1021_v58  ;;  %v1108_v45 = vpop.trf.xlu0  ;;  %2404 = vmatmul.msk.bf16.gmra.mxu3 %vm88_vm2, %v1873_v60 }
 0x1f3   :  { %v797_v14 = vadd.f32 %v796_v22, %v766_v9  ;;  %v496_v47 = vmax.f32 %v429_v40, 0.0  ;;  %2196 = vmatmul.msk.bf16.gmra.mxu1 %vm88_vm2, %v2855_v53  ;;  %2296 = vmatmul.msk.bf16.gmra.mxu0 %vm88_vm2, %v1108_v45  ;;  %v289_v7 = vadd.f32 %v288_v59, %v258_v63  ;;  %v3026_v9 = vpop.trf.xlu1 }
 0x1f4   :  { %2368 = vmatmul.msk.bf16.gmra.mxu2 %vm88_vm2, %v2960_v18 }
 0x1f5   :  { %v527_v50 = vadd.f32 %v526_v62, %v496_v47  ;;  %v978_v51 = vpop.f32.mrf.mxu3 }
 0x1f6   :  { %v218_v52 = vpop.f32.mrf.mxu0  ;;  %v723_v37 = vpop.f32.mrf.mxu2  ;;  %v979_v54 = vadd.f32 %v2753_v20, %v978_v51 }
 0x1f7   :  { %v219_v11 = vadd.f32 %v2753_v20, %v218_v52  ;;  %v724_v60 = vadd.f32 %v2753_v20, %v723_v37 }
 0x1f8   :  { %v1022_v53 = vmax.f32 %v979_v54, 0.0  ;;  %v430_v2 = vpop.f32.mrf.mxu1 }
 0x1f9   :  { %v259_v8 = vmax.f32 %v219_v11, 0.0  ;;  %v767_v12 = vmax.f32 %v724_v60, 0.0  ;;  %v431_v0 = vadd.f32 %v2753_v20, %v430_v2 }
 0x1fa   :  { %v1053_v18 = vadd.f32 %v1052_v10, %v1022_v53  ;;  %v3012_v3 = vpop.trf.xlu0 }
 0x1fb   :  { %v290_v4 = vadd.f32 %v289_v7, %v259_v8  ;;  %v798_v25 = vadd.f32 %v797_v14, %v767_v12  ;;  %v497_v17 = vmax.f32 %v431_v0, 0.0  ;;  %v1877_v8 = vpop.trf.xlu2  ;;  %v3036_v12 = vpop.trf.xlu1 }
 0x1fd   :  { %v528_v24 = vadd.f32 %v527_v50, %v497_v17  ;;  %v980_v27 = vpop.f32.mrf.mxu3 }
 0x1fe   :  { %v220_v28 = vpop.f32.mrf.mxu0  ;;  %v725_v29 = vpop.f32.mrf.mxu2  ;;  %v981_v22 = vadd.f32 %v2753_v20, %v980_v27 }
 0x1ff   :  { %v726_v59 = vadd.f32 %v2753_v20, %v725_v29  ;;  %v221_v23 = vadd.f32 %v2753_v20, %v220_v28  ;;  %v3043_v29 = vld [vmem:[%s3359_s2] ss:$0 sm:$0xff] }
 0x200   :  { %v1023_v31 = vmax.f32 %v981_v22, 0.0  ;;  %v433_v62 = vpop.f32.mrf.mxu1 }
 0x201   :  { %v768_v35 = vmax.f32 %v726_v59, 0.0  ;;  %v434_v36 = vadd.f32 %v2753_v20, %v433_v62  ;;  %v260_v40 = vmax.f32 %v221_v23, 0.0 }
 0x202   :  { %v1054_v41 = vadd.f32 %v1053_v18, %v1023_v31  ;;  %v1110_v58 = vpop.trf.xlu0  ;;  %2405 = vmatmul.msk.bf16.gmra.mxu3 %vm88_vm2, %v1875_v21 }
 0x203   :  { %v799_v6 = vadd.f32 %v798_v25, %v768_v35  ;;  %v498_v42 = vmax.f32 %v434_v36, 0.0  ;;  %2197 = vmatmul.msk.bf16.gmra.mxu1 %vm88_vm2, %v2870_v30  ;;  %2297 = vmatmul.msk.bf16.gmra.mxu0 %vm88_vm2, %v1110_v58  ;;  %v291_v37 = vadd.f32 %v290_v4, %v260_v40 }
 0x204   :  { %2369 = vmatmul.msk.bf16.gmra.mxu2 %vm88_vm2, %v2982_v1 }
 0x205   :  { %v529_v10 = vadd.f32 %v528_v24, %v498_v42  ;;  %v983_v45 = vpop.f32.mrf.mxu3  ;;  %v3055_v42 = vpop.trf.xlu2 }
 0x206   :  { %v223_v14 = vpop.f32.mrf.mxu0  ;;  %v728_v47 = vpop.f32.mrf.mxu2  ;;  %v984_v63 = vadd.f32 %v2753_v20, %v983_v45 }
 0x207   :  { %v224_v50 = vadd.f32 %v2753_v20, %v223_v14  ;;  %v729_v51 = vadd.f32 %v2753_v20, %v728_v47 }
 0x208   :  { %v1024_v52 = vmax.f32 %v984_v63, 0.0  ;;  %v435_v30 = vpop.f32.mrf.mxu1 }
 0x209   :  { %v261_v54 = vmax.f32 %v224_v50, 0.0  ;;  %v769_v11 = vmax.f32 %v729_v51, 0.0  ;;  %v436_v60 = vadd.f32 %v2753_v20, %v435_v30 }
 0x20a   :  { %v1055_v21 = vadd.f32 %v1054_v41, %v1024_v52  ;;  %v3034_v1 = vpop.trf.xlu0 }
 0x20b   :  { %v292_v53 = vadd.f32 %v291_v37, %v261_v54  ;;  %v800_v2 = vadd.f32 %v799_v6, %v769_v11  ;;  %v499_v7 = vmax.f32 %v436_v60, 0.0 }
 0x20d   :  { %v530_v0 = vadd.f32 %v529_v10, %v499_v7  ;;  %v985_v18 = vpop.f32.mrf.mxu3 }
 0x20e   :  { %v225_v25 = vpop.f32.mrf.mxu0  ;;  %v730_v17 = vpop.f32.mrf.mxu2  ;;  %v986_v24 = vadd.f32 %v2753_v20, %v985_v18 }
 0x20f   :  { %v731_v4 = vadd.f32 %v2753_v20, %v730_v17  ;;  %v226_v22 = vadd.f32 %v3043_v29, %v225_v25  ;;  %v3053_v20 = vpop.trf.xlu1  ;;  %v1879_v18 = vpop.trf.xlu2 }
 0x210   :  { %v1025_v27 = vmax.f32 %v986_v24, 0.0  ;;  %v438_v28 = vpop.f32.mrf.mxu1 }
 0x211   :  { %v770_v59 = vmax.f32 %v731_v4, 0.0  ;;  %v439_v31 = vadd.f32 %v3043_v29, %v438_v28  ;;  %v262_v41 = vmax.f32 %v226_v22, 0.0 }
 0x212   :  { %v1056_v62 = vadd.f32 %v1055_v21, %v1025_v27  ;;  %v1112_v23 = vpop.trf.xlu0  ;;  %2406 = vmatmul.msk.bf16.gmra.mxu3 %vm88_vm2, %v1877_v8 }
 0x213   :  { %v801_v35 = vadd.f32 %v800_v2, %v770_v59  ;;  %v500_v36 = vmax.f32 %v439_v31, 0.0  ;;  %2198 = vmatmul.msk.bf16.gmra.mxu1 %vm88_vm2, %v2886_v16  ;;  %2298 = vmatmul.msk.bf16.gmra.mxu0 %vm88_vm2, %v1112_v23  ;;  %v293_v50 = vadd.f32 %v292_v53, %v262_v41 }
 0x214   :  { %2370 = vmatmul.msk.bf16.gmra.mxu2 %vm88_vm2, %v3004_v48 }
 0x215   :  { %v531_v58 = vadd.f32 %v530_v0, %v500_v36  ;;  %v988_v6 = vpop.f32.mrf.mxu3 }
 0x216   :  { %v228_v40 = vpop.f32.mrf.mxu0  ;;  %v733_v10 = vpop.f32.mrf.mxu2  ;;  %v989_v45 = vadd.f32 %v3043_v29, %v988_v6 }
 0x217   :  { %v229_v14 = vadd.f32 %v3043_v29, %v228_v40  ;;  %v734_v16 = vadd.f32 %v3043_v29, %v733_v10  ;;  %v3065_v7 = vpop.trf.xlu1 }
 0x218   :  { %v1026_v47 = vmax.f32 %v989_v45, 0.0  ;;  %v440_v63 = vpop.f32.mrf.mxu1 }
 0x219   :  { %v263_v51 = vmax.f32 %v229_v14, 0.0  ;;  %v771_v48 = vmax.f32 %v734_v16, 0.0  ;;  %v441_v52 = vadd.f32 %v3043_v29, %v440_v63 }
 0x21a   :  { %v1057_v30 = vadd.f32 %v1056_v62, %v1026_v47  ;;  %v3061_v37 = vpop.trf.xlu0 }
 0x21b   :  { %v3063_v54 = vadd.f32 %v293_v50, %v263_v51  ;;  %v802_v11 = vadd.f32 %v801_v35, %v771_v48  ;;  %v501_v60 = vmax.f32 %v441_v52, 0.0 }
 0x21d   :  { %v532_v21 = vadd.f32 %v531_v58, %v501_v60  ;;  %v990_v2 = vpop.f32.mrf.mxu3 }
 0x21e   :  { %v735_v8 = vpop.f32.mrf.mxu2  ;;  %v991_v0 = vadd.f32 %v3043_v29, %v990_v2  ;;  %v3078_v58 = vpop.f32.mrf.mxu0 }
 0x21f   :  { %v736_v53 = vadd.f32 %v3043_v29, %v735_v8  ;;  %v1357_v41 = vpop.trf.xlu1 }
 0x220   :  { %v1027_v25 = vmax.f32 %v991_v0, 0.0  ;;  %v443_v17 = vpop.f32.mrf.mxu1 }
 0x221   :  { %v772_v24 = vmax.f32 %v736_v53, 0.0  ;;  %v444_v4 = vadd.f32 %v3043_v29, %v443_v17 }
 0x222   :  { %v1058_v27 = vadd.f32 %v1057_v30, %v1027_v25  ;;  %v1114_v28 = vpop.trf.xlu0  ;;  %2407 = vmatmul.msk.bf16.gmra.mxu3 %vm88_vm2, %v1879_v18 }
 0x223   :  { %v803_v22 = vadd.f32 %v802_v11, %v772_v24  ;;  %v502_v59 = vmax.f32 %v444_v4, 0.0  ;;  %2199 = vmatmul.msk.bf16.gmra.mxu1 %vm88_vm2, %v2904_v5  ;;  %2299 = vmatmul.msk.bf16.gmra.mxu0 %vm88_vm2, %v1114_v28 }
 0x224   :  { %2371 = vmatmul.msk.bf16.gmra.mxu2 %vm88_vm2, %v3026_v9 }
 0x225   :  { %v533_v31 = vadd.f32 %v532_v21, %v502_v59  ;;  %v993_v62 = vpop.f32.mrf.mxu3 }
 0x226   :  { %v738_v23 = vpop.f32.mrf.mxu2  ;;  %v994_v35 = vadd.f32 %v3043_v29, %v993_v62 }
 0x227   :  { %v739_v36 = vadd.f32 %v3043_v29, %v738_v23  ;;  %v3084_v21 = vpop.trf.xlu1 }
 0x228   :  { %v1028_v6 = vmax.f32 %v994_v35, 0.0  ;;  %v445_v40 = vpop.f32.mrf.mxu1 }
 0x229   :  { %v773_v10 = vmax.f32 %v739_v36, 0.0  ;;  %v446_v5 = vadd.f32 %v3043_v29, %v445_v40 }
 0x22a   :  { %v1059_v45 = vadd.f32 %v1058_v27, %v1028_v6 }
 0x22b   :  { %v804_v14 = vadd.f32 %v803_v22, %v773_v10  ;;  %v503_v16 = vmax.f32 %v446_v5, 0.0 }
 0x22d   :  { %v534_v47 = vadd.f32 %v533_v31, %v503_v16  ;;  %v995_v9 = vpop.f32.mrf.mxu3 }
 0x22e   :  { %v740_v63 = vpop.f32.mrf.mxu2  ;;  %v996_v50 = vadd.f32 %v3043_v29, %v995_v9 }
 0x22f   :  { %v741_v51 = vadd.f32 %v3043_v29, %v740_v63 }
 0x230   :  { %v1029_v48 = vmax.f32 %v996_v50, 0.0  ;;  %v448_v52 = vpop.f32.mrf.mxu1  ;;  %v1173_v30 = vpop.f32.mrf.mxu0 }
 0x231   :  { %v774_v11 = vmax.f32 %v741_v51, 0.0  ;;  %v449_v60 = vadd.f32 %v3043_v29, %v448_v52  ;;  %v1174_v18 = vadd.f32 %v3043_v29, %v1173_v30 }
 0x232   :  { %v3086_v2 = vadd.f32 %v1059_v45, %v1029_v48  ;;  %2408 = vmatmul.msk.bf16.gmra.mxu3 %vm88_vm2, %v2890_v56 }
 0x233   :  { %v3090_v8 = vadd.f32 %v804_v14, %v774_v11  ;;  %v504_v0 = vmax.f32 %v449_v60, 0.0  ;;  %2300 = vmatmul.msk.bf16.gmra.mxu0 %vm88_vm2, %v2926_v43  ;;  %2328 = vmatmul.msk.bf16.vlgmr.msrb.gmra.mxu1 %vm88_vm2, %v3053_v20  ;;  %v1253_v56 = vmax.f32 %v1174_v18, 0.0  ;;  %v1359_v20 = vpop.trf.xlu1 }
 0x234   :  { %2372 = vmatmul.msk.bf16.gmra.mxu2 %vm88_vm2, %v2888_v55 }
 0x235   :  { %v535_v53 = vadd.f32 %v534_v47, %v504_v0  ;;  %v1938_v25 = vpop.f32.mrf.mxu3 }
 0x236   :  { %v1939_v43 = vadd.f32 %v3043_v29, %v1938_v25 }
 0x237   :  { %v1683_v17 = vpop.f32.mrf.mxu2 }
 0x238   :  { %v450_v24 = vpop.f32.mrf.mxu1  ;;  %v1175_v4 = vpop.f32.mrf.mxu0  ;;  %v1684_v23 = vadd.f32 %v3043_v29, %v1683_v17  ;;  %v2018_v35 = vmax.f32 %v1939_v43, 0.0 }
 0x239   :  { %v451_v27 = vadd.f32 %v3043_v29, %v450_v24  ;;  %v1176_v28 = vadd.f32 %v3043_v29, %v1175_v4 }
 0x23a   :  { %v1763_v47 = vmax.f32 %v1684_v23, 0.0 }
 0x23b   :  { %v505_v22 = vmax.f32 %v451_v27, 0.0  ;;  %v1254_v59 = vmax.f32 %v1176_v28, 0.0  ;;  %v3114_v60 = vpop.trf.xlu1 }
 0x23d   :  { %v536_v31 = vadd.f32 %v535_v53, %v505_v22  ;;  %v1285_v62 = vadd.f32 %v1254_v59, %v1253_v56  ;;  %v1940_v55 = vpop.f32.mrf.mxu3 }
 0x23e   :  { %v1941_v36 = vadd.f32 %v3043_v29, %v1940_v55 }
 0x23f   :  { %v1685_v6 = vpop.f32.mrf.mxu2 }
 0x240   :  { %v1686_v40 = vadd.f32 %v3043_v29, %v1685_v6  ;;  %v2019_v10 = vmax.f32 %v1941_v36, 0.0  ;;  %v453_v5 = vpop.f32.mrf.mxu1  ;;  %v1178_v45 = vpop.f32.mrf.mxu0 }
 0x241   :  { %v454_v14 = vadd.f32 %v3043_v29, %v453_v5  ;;  %v1179_v16 = vadd.f32 %v3043_v29, %v1178_v45 }
 0x242   :  { %v1764_v9 = vmax.f32 %v1686_v40, 0.0  ;;  %v2050_v63 = vadd.f32 %v2019_v10, %v2018_v35  ;;  %2409 = vmatmul.msk.bf16.gmra.mxu3 %vm88_vm2, %v2911_v39 }
 0x243   :  { %v506_v50 = vmax.f32 %v454_v14, 0.0  ;;  %v1255_v51 = vmax.f32 %v1179_v16, 0.0  ;;  %2301 = vmatmul.msk.bf16.gmra.mxu0 %vm88_vm2, %v2948_v15  ;;  %2329 = vmatmul.msk.bf16.gmra.mxu1 %vm88_vm2, %v1357_v41 }
 0x244   :  { %v1795_v48 = vadd.f32 %v1764_v9, %v1763_v47  ;;  %2373 = vmatmul.msk.bf16.gmra.mxu2 %vm88_vm2, %v2906_v33 }
 0x245   :  { %v537_v52 = vadd.f32 %v536_v31, %v506_v50  ;;  %v1286_v30 = vadd.f32 %v1285_v62, %v1255_v51  ;;  %v1943_v11 = vpop.f32.mrf.mxu3  ;;  %v1361_v62 = vpop.trf.xlu1 }
 0x246   :  { %v1944_v0 = vadd.f32 %v3043_v29, %v1943_v11 }
 0x247   :  { %v1688_v53 = vpop.f32.mrf.mxu2 }
 0x248   :  { %v1689_v39 = vadd.f32 %v3043_v29, %v1688_v53  ;;  %v2020_v18 = vmax.f32 %v1944_v0, 0.0  ;;  %v455_v25 = vpop.f32.mrf.mxu1  ;;  %v1180_v17 = vpop.f32.mrf.mxu0 }
 0x249   :  { %v456_v15 = vadd.f32 %v3043_v29, %v455_v25  ;;  %v1181_v41 = vadd.f32 %v3043_v29, %v1180_v17 }
 0x24a   :  { %v1765_v24 = vmax.f32 %v1689_v39, 0.0  ;;  %v2051_v4 = vadd.f32 %v2050_v63, %v2020_v18 }
 0x24b   :  { %v507_v33 = vmax.f32 %v456_v15, 0.0  ;;  %v1256_v56 = vmax.f32 %v1181_v41, 0.0 }
 0x24c   :  { %v1796_v27 = vadd.f32 %v1795_v48, %v1765_v24 }
 0x24d   :  { %v538_v28 = vadd.f32 %v537_v52, %v507_v33  ;;  %v1287_v43 = vadd.f32 %v1286_v30, %v1256_v56  ;;  %v1945_v22 = vpop.f32.mrf.mxu3 }
 0x24e   :  { %v1946_v59 = vadd.f32 %v3043_v29, %v1945_v22 }
 0x24f   :  { %v1690_v31 = vpop.f32.mrf.mxu2 }
 0x250   :  { %v1691_v55 = vadd.f32 %v3043_v29, %v1690_v31  ;;  %v2021_v23 = vmax.f32 %v1946_v59, 0.0  ;;  %v458_v35 = vpop.f32.mrf.mxu1  ;;  %v1183_v36 = vpop.f32.mrf.mxu0 }
 0x251   :  { %v459_v6 = vadd.f32 %v3043_v29, %v458_v35  ;;  %v1184_v40 = vadd.f32 %v3043_v29, %v1183_v36 }
 0x252   :  { %v1766_v10 = vmax.f32 %v1691_v55, 0.0  ;;  %v2052_v5 = vadd.f32 %v2051_v4, %v2021_v23  ;;  %2410 = vmatmul.msk.bf16.gmra.mxu3 %vm88_vm2, %v2942_v61 }
 0x253   :  { %v508_v45 = vmax.f32 %v459_v6, 0.0  ;;  %v1257_v14 = vmax.f32 %v1184_v40, 0.0  ;;  %2302 = vmatmul.msk.bf16.gmra.mxu0 %vm88_vm2, %v2970_v38  ;;  %2330 = vmatmul.msk.bf16.gmra.mxu1 %vm88_vm2, %v1359_v20  ;;  %v3135_v20 = vpop.trf.xlu1 }
 0x254   :  { %v1797_v16 = vadd.f32 %v1796_v27, %v1766_v10  ;;  %2374 = vmatmul.msk.bf16.gmra.mxu2 %vm88_vm2, %v2928_v49 }
 0x255   :  { %v539_v47 = vadd.f32 %v538_v28, %v508_v45  ;;  %v1288_v9 = vadd.f32 %v1287_v43, %v1257_v14  ;;  %v1948_v63 = vpop.f32.mrf.mxu3 }
 0x256   :  { %v1949_v50 = vadd.f32 %v3043_v29, %v1948_v63 }
 0x257   :  { %v1693_v51 = vpop.f32.mrf.mxu2 }
 0x258   :  { %v1694_v48 = vadd.f32 %v3043_v29, %v1693_v51  ;;  %v2022_v61 = vmax.f32 %v1949_v50, 0.0  ;;  %v460_v52 = vpop.f32.mrf.mxu1  ;;  %v1185_v30 = vpop.f32.mrf.mxu0 }
 0x259   :  { %v461_v11 = vadd.f32 %v3043_v29, %v460_v52  ;;  %v1186_v38 = vadd.f32 %v3043_v29, %v1185_v30 }
 0x25a   :  { %v1767_v0 = vmax.f32 %v1694_v48, 0.0  ;;  %v2053_v53 = vadd.f32 %v2052_v5, %v2022_v61 }
 0x25b   :  { %v509_v49 = vmax.f32 %v461_v11, 0.0  ;;  %v1258_v39 = vmax.f32 %v1186_v38, 0.0  ;;  %v1363_v23 = vpop.trf.xlu1 }
 0x25c   :  { %v1798_v18 = vadd.f32 %v1797_v16, %v1767_v0 }
 0x25d   :  { %v540_v25 = vadd.f32 %v539_v47, %v509_v49  ;;  %v1289_v17 = vadd.f32 %v1288_v9, %v1258_v39  ;;  %v1950_v15 = vpop.f32.mrf.mxu3 }
 0x25e   :  { %v1951_v41 = vadd.f32 %v3043_v29, %v1950_v15 }
 0x25f   :  { %v1695_v24 = vpop.f32.mrf.mxu2 }
 0x260   :  { %v1696_v4 = vadd.f32 %v3043_v29, %v1695_v24  ;;  %v2023_v33 = vmax.f32 %v1951_v41, 0.0  ;;  %v463_v56 = vpop.f32.mrf.mxu1  ;;  %v1188_v27 = vpop.f32.mrf.mxu0 }
 0x261   :  { %v464_v28 = vadd.f32 %v3043_v29, %v463_v56  ;;  %v1189_v43 = vadd.f32 %v3043_v29, %v1188_v27 }
 0x262   :  { %v1768_v22 = vmax.f32 %v1696_v4, 0.0  ;;  %v2054_v59 = vadd.f32 %v2053_v53, %v2023_v33  ;;  %2411 = vmatmul.msk.bf16.gmra.mxu3 %vm88_vm2, %v2968_v26 }
 0x263   :  { %v510_v31 = vmax.f32 %v464_v28, 0.0  ;;  %v1259_v55 = vmax.f32 %v1189_v43, 0.0  ;;  %2303 = vmatmul.msk.bf16.gmra.mxu0 %vm88_vm2, %v2990_v34  ;;  %2331 = vmatmul.msk.bf16.gmra.mxu1 %vm88_vm2, %v1361_v62  ;;  %v3152_v52 = vpop.trf.xlu1 }
 0x264   :  { %v1799_v35 = vadd.f32 %v1798_v18, %v1768_v22  ;;  %2375 = vmatmul.msk.bf16.gmra.mxu2 %vm88_vm2, %v2950_v44 }
 0x265   :  { %v541_v36 = vadd.f32 %v540_v25, %v510_v31  ;;  %v1290_v6 = vadd.f32 %v1289_v17, %v1259_v55  ;;  %v1953_v40 = vpop.f32.mrf.mxu3 }
 0x266   :  { %v1954_v10 = vadd.f32 %v3043_v29, %v1953_v40 }
 0x267   :  { %v1698_v5 = vpop.f32.mrf.mxu2 }
 0x268   :  { %v1699_v26 = vadd.f32 %v3043_v29, %v1698_v5  ;;  %v2024_v45 = vmax.f32 %v1954_v10, 0.0  ;;  %v465_v14 = vpop.f32.mrf.mxu1  ;;  %v1190_v16 = vpop.f32.mrf.mxu0 }
 0x269   :  { %v466_v34 = vadd.f32 %v3043_v29, %v465_v14  ;;  %v1191_v62 = vadd.f32 %v3043_v29, %v1190_v16 }
 0x26a   :  { %v1769_v47 = vmax.f32 %v1699_v26, 0.0  ;;  %v2055_v9 = vadd.f32 %v2054_v59, %v2024_v45 }
 0x26b   :  { %v511_v63 = vmax.f32 %v466_v34, 0.0  ;;  %v1260_v50 = vmax.f32 %v1191_v62, 0.0  ;;  %v1365_v43 = vpop.trf.xlu1 }
 0x26c   :  { %v1800_v44 = vadd.f32 %v1799_v35, %v1769_v47 }
 0x26d   :  { %v542_v51 = vadd.f32 %v541_v36, %v511_v63  ;;  %v1291_v48 = vadd.f32 %v1290_v6, %v1260_v50  ;;  %v1955_v61 = vpop.f32.mrf.mxu3 }
 0x26e   :  { %v1956_v30 = vadd.f32 %v3043_v29, %v1955_v61 }
 0x26f   :  { %v1700_v11 = vpop.f32.mrf.mxu2 }
 0x270   :  { %v1701_v38 = vadd.f32 %v3043_v29, %v1700_v11  ;;  %v2025_v0 = vmax.f32 %v1956_v30, 0.0  ;;  %v468_v53 = vpop.f32.mrf.mxu1  ;;  %v1193_v49 = vpop.f32.mrf.mxu0 }
 0x271   :  { %v469_v39 = vadd.f32 %v3043_v29, %v468_v53  ;;  %v1194_v18 = vadd.f32 %v3043_v29, %v1193_v49 }
 0x272   :  { %v1770_v25 = vmax.f32 %v1701_v38, 0.0  ;;  %v2056_v17 = vadd.f32 %v2055_v9, %v2025_v0  ;;  %2412 = vmatmul.msk.bf16.gmra.mxu3 %vm88_vm2, %v2994_v32 }
 0x273   :  { %v512_v15 = vmax.f32 %v469_v39, 0.0  ;;  %v1261_v41 = vmax.f32 %v1194_v18, 0.0  ;;  %2304 = vmatmul.msk.bf16.gmra.mxu0 %vm88_vm2, %v3012_v3  ;;  %2332 = vmatmul.msk.bf16.gmra.mxu1 %vm88_vm2, %v1363_v23  ;;  %v3173_v63 = vpop.trf.xlu1 }
 0x274   :  { %v1801_v24 = vadd.f32 %v1800_v44, %v1770_v25  ;;  %2376 = vmatmul.msk.bf16.gmra.mxu2 %vm88_vm2, %v2972_v13 }
 0x275   :  { %v543_v4 = vadd.f32 %v542_v51, %v512_v15  ;;  %v1292_v33 = vadd.f32 %v1291_v48, %v1261_v41  ;;  %v1958_v56 = vpop.f32.mrf.mxu3 }
 0x276   :  { %v1959_v27 = vadd.f32 %v3043_v29, %v1958_v56 }
 0x277   :  { %v1703_v28 = vpop.f32.mrf.mxu2 }
 0x278   :  { %v1704_v32 = vadd.f32 %v3043_v29, %v1703_v28  ;;  %v2026_v22 = vmax.f32 %v1959_v27, 0.0  ;;  %v470_v59 = vpop.f32.mrf.mxu1  ;;  %v1195_v31 = vpop.f32.mrf.mxu0 }
 0x279   :  { %v471_v3 = vadd.f32 %v3043_v29, %v470_v59  ;;  %v1196_v55 = vadd.f32 %v3043_v29, %v1195_v31 }
 0x27a   :  { %v1771_v23 = vmax.f32 %v1704_v32, 0.0  ;;  %v2057_v35 = vadd.f32 %v2056_v17, %v2026_v22 }
 0x27b   :  { %v513_v36 = vmax.f32 %v471_v3, 0.0  ;;  %v1262_v13 = vmax.f32 %v1196_v55, 0.0 }
 0x27c   :  { %v1802_v6 = vadd.f32 %v1801_v24, %v1771_v23 }
 0x27d   :  { %v544_v40 = vadd.f32 %v543_v4, %v513_v36  ;;  %v1293_v10 = vadd.f32 %v1292_v33, %v1262_v13  ;;  %v1960_v5 = vpop.f32.mrf.mxu3 }
 0x27e   :  { %v1961_v26 = vadd.f32 %v3043_v29, %v1960_v5 }
 0x27f   :  { %v1705_v45 = vpop.f32.mrf.mxu2 }
 0x280   :  { %v1706_v14 = vadd.f32 %v3043_v29, %v1705_v45  ;;  %v2027_v16 = vmax.f32 %v1961_v26, 0.0  ;;  %v473_v34 = vpop.f32.mrf.mxu1  ;;  %v1198_v62 = vpop.f32.mrf.mxu0 }
 0x281   :  { %v474_v47 = vadd.f32 %v3043_v29, %v473_v34  ;;  %v1199_v9 = vadd.f32 %v3043_v29, %v1198_v62 }
 0x282   :  { %v1772_v50 = vmax.f32 %v1706_v14, 0.0  ;;  %v2058_v44 = vadd.f32 %v2057_v35, %v2027_v16  ;;  %2413 = vmatmul.msk.bf16.gmra.mxu3 %vm88_vm2, %v3020_v46 }
 0x283   :  { %v514_v51 = vmax.f32 %v474_v47, 0.0  ;;  %v1263_v48 = vmax.f32 %v1199_v9, 0.0  ;;  %2305 = vmatmul.msk.bf16.gmra.mxu0 %vm88_vm2, %v3034_v1  ;;  %2333 = vmatmul.msk.bf16.gmra.mxu1 %vm88_vm2, %v1365_v43 }
 0x284   :  { %v1803_v61 = vadd.f32 %v1802_v6, %v1772_v50  ;;  %2377 = vmatmul.msk.bf16.gmra.mxu2 %vm88_vm2, %v2992_v57  ;;  %v1367_v57 = vpop.trf.xlu1 }
 0x285   :  { %v545_v30 = vadd.f32 %v544_v40, %v514_v51  ;;  %v1294_v11 = vadd.f32 %v1293_v10, %v1263_v48  ;;  %v1963_v38 = vpop.f32.mrf.mxu3 }
 0x286   :  { %v1964_v0 = vadd.f32 %v3043_v29, %v1963_v38 }
 0x287   :  { %v1708_v53 = vpop.f32.mrf.mxu2 }
 0x288   :  { %v1709_v49 = vadd.f32 %v3043_v29, %v1708_v53  ;;  %v2028_v46 = vmax.f32 %v1964_v0, 0.0  ;;  %v475_v39 = vpop.f32.mrf.mxu1  ;;  %v1200_v18 = vpop.f32.mrf.mxu0 }
 0x289   :  { %v476_v25 = vadd.f32 %v3043_v29, %v475_v39  ;;  %v1201_v1 = vadd.f32 %v3043_v29, %v1200_v18  ;;  %v1115_v0 = vpop.trf.xlu0  ;;  %v1880_v53 = vpop.trf.xlu2 }
 0x28a   :  { %v1773_v17 = vmax.f32 %v1709_v49, 0.0  ;;  %v2059_v15 = vadd.f32 %v2058_v44, %v2028_v46 }
 0x28b   :  { %v515_v41 = vmax.f32 %v476_v25, 0.0  ;;  %v1264_v24 = vmax.f32 %v1201_v1, 0.0 }
 0x28c   :  { %v1804_v4 = vadd.f32 %v1803_v61, %v1773_v17  ;;  %v3197_v26 = vpop.trf.xlu1 }
 0x28d   :  { %v546_v33 = vadd.f32 %v545_v30, %v515_v41  ;;  %v1295_v56 = vadd.f32 %v1294_v11, %v1264_v24  ;;  %v1965_v27 = vpop.f32.mrf.mxu3 }
 0x28e   :  { %v1966_v28 = vadd.f32 %v3043_v29, %v1965_v27 }
 0x28f   :  { %v1710_v43 = vpop.f32.mrf.mxu2 }
 0x290   :  { %v1711_v32 = vadd.f32 %v3043_v29, %v1710_v43  ;;  %v2029_v22 = vmax.f32 %v1966_v28, 0.0  ;;  %v478_v59 = vpop.f32.mrf.mxu1  ;;  %v1203_v31 = vpop.f32.mrf.mxu0 }
 0x291   :  { %v479_v3 = vadd.f32 %v3043_v29, %v478_v59  ;;  %v1204_v55 = vadd.f32 %v3043_v29, %v1203_v31 }
 0x292   :  { %v1774_v23 = vmax.f32 %v1711_v32, 0.0  ;;  %v2060_v35 = vadd.f32 %v2059_v15, %v2029_v22  ;;  %2414 = vmatmul.msk.bf16.gmra.mxu3 %vm88_vm2, %v3055_v42  ;;  %v231_v42 = vadd.f32 %v3043_v29, %v3078_v58  ;;  %v806_v22 = vrot.slane %v3090_v8, 4 }
 0x293   :  { %v516_v36 = vmax.f32 %v479_v3, 0.0  ;;  %v1265_v13 = vmax.f32 %v1204_v55, 0.0  ;;  %2306 = vmatmul.msk.bf16.gmra.mxu0 %vm88_vm2, %v3061_v37  ;;  %2334 = vmatmul.msk.bf16.gmra.mxu1 %vm88_vm2, %v1367_v57 }
 0x294   :  { %v1805_v6 = vadd.f32 %v1804_v4, %v1774_v23  ;;  %2378 = vmatmul.msk.bf16.gmra.mxu2 %vm88_vm2, %v3014_v19  ;;  %v264_v44 = vmax.f32 %v231_v42, 0.0  ;;  %v1369_v39 = vpop.trf.xlu1 }
 0x295   :  { %v547_v40 = vadd.f32 %v546_v33, %v516_v36  ;;  %v1296_v10 = vadd.f32 %v1295_v56, %v1265_v13  ;;  %v1968_v5 = vpop.f32.mrf.mxu3 }
 0x296   :  { %v1969_v45 = vadd.f32 %v3043_v29, %v1968_v5  ;;  %v295_v49 = vadd.f32 %v3063_v54, %v264_v44  ;;  %v1061_v54 = vrot.slane %v3086_v2, 4 }
 0x297   :  { %v1713_v14 = vpop.f32.mrf.mxu2 }
 0x298   :  { %v1714_v16 = vadd.f32 %v3043_v29, %v1713_v14  ;;  %v2030_v37 = vmax.f32 %v1969_v45, 0.0  ;;  %v480_v34 = vpop.f32.mrf.mxu1  ;;  %v1205_v62 = vpop.f32.mrf.mxu0  ;;  %v296_v4 = vrot.slane %v295_v49, 4  ;;  %v1062_v55 = vadd.f32 %v1061_v54, %v3086_v2 }
 0x299   :  { %v481_v47 = vadd.f32 %v3043_v29, %v480_v34  ;;  %v1206_v19 = vadd.f32 %v3043_v29, %v1205_v62 }
 0x29a   :  { %v1775_v9 = vmax.f32 %v1714_v16, 0.0  ;;  %v2061_v50 = vadd.f32 %v2060_v35, %v2030_v37  ;;  %v297_v31 = vadd.f32 %v296_v4, %v295_v49  ;;  %v1063_v16 = vrot.slane %v1062_v55, 2 }
 0x29b   :  { %v517_v51 = vmax.f32 %v481_v47, 0.0  ;;  %v1266_v48 = vmax.f32 %v1206_v19, 0.0 }
 0x29c   :  { %v1806_v61 = vadd.f32 %v1805_v6, %v1775_v9  ;;  %v298_v45 = vrot.slane %v297_v31, 2 }
 0x29d   :  { %v548_v30 = vadd.f32 %v547_v40, %v517_v51  ;;  %v1297_v11 = vadd.f32 %v1296_v10, %v1266_v48  ;;  %v1970_v38 = vpop.f32.mrf.mxu3  ;;  %v807_v40 = vadd.f32 %v806_v22, %v3090_v8  ;;  %v1064_v51 = vadd.f32 %v1063_v16, %v1062_v55 }
 0x29e   :  { %v1971_v58 = vadd.f32 %v3043_v29, %v1970_v38  ;;  %v299_v9 = vadd.f32 %v298_v45, %v297_v31 }
 0x29f   :  { %v1715_v46 = vpop.f32.mrf.mxu2  ;;  %v808_v47 = vrot.slane %v807_v40, 2 }
 0x2a0   :  { %v1716_v18 = vadd.f32 %v3043_v29, %v1715_v46  ;;  %v2031_v25 = vmax.f32 %v1971_v58, 0.0  ;;  %v483_v1 = vpop.f32.mrf.mxu1  ;;  %v1208_v17 = vpop.f32.mrf.mxu0  ;;  %v300_v49 = vrot.slane %v299_v9, 1 }
 0x2a1   :  { %v484_v15 = vadd.f32 %v3043_v29, %v483_v1  ;;  %v1209_v41 = vadd.f32 %v3043_v29, %v1208_v17  ;;  %v809_v58 = vadd.f32 %v808_v47, %v807_v40 }
 0x2a2   :  { %v1776_v24 = vmax.f32 %v1716_v18, 0.0  ;;  %v2062_v57 = vadd.f32 %v2061_v50, %v2031_v25  ;;  %2415 = vmatmul.msk.bf16.gmra.mxu3 %vm88_vm2, %v1880_v53  ;;  %v1065_v18 = vrot.slane %v1064_v51, 1 }
 0x2a3   :  { %v518_v33 = vmax.f32 %v484_v15, 0.0  ;;  %v1267_v56 = vmax.f32 %v1209_v41, 0.0  ;;  %2307 = vmatmul.msk.bf16.gmra.mxu0 %vm88_vm2, %v1115_v0  ;;  %2335 = vmatmul.msk.bf16.gmra.mxu1 %vm88_vm2, %v1369_v39  ;;  %v810_v41 = vrot.slane %v809_v58, 1 }
 0x2a4   :  { %v1807_v27 = vadd.f32 %v1806_v61, %v1776_v24  ;;  %2379 = vmatmul.msk.bf16.gmra.mxu2 %vm88_vm2, %v3036_v12  ;;  %v1066_v54 = vadd.f32 %v1065_v18, %v1064_v51 }
 0x2a5   :  { %v549_v28 = vadd.f32 %v548_v30, %v518_v33  ;;  %v1298_v43 = vadd.f32 %v1297_v11, %v1267_v56  ;;  %v1973_v32 = vpop.f32.mrf.mxu3  ;;  %v811_v31 = vadd.f32 %v810_v41, %v809_v58 }
 0x2a6   :  { %v1974_v59 = vadd.f32 %v3043_v29, %v1973_v32 }
 0x2a7   :  { %v1718_v3 = vpop.f32.mrf.mxu2 }
 0x2a8   :  { %v1719_v23 = vadd.f32 %v3043_v29, %v1718_v3  ;;  %v2032_v35 = vmax.f32 %v1974_v59, 0.0  ;;  %v485_v36 = vpop.f32.mrf.mxu1  ;;  %v1210_v13 = vpop.f32.mrf.mxu0 }
 0x2a9   :  { %v486_v6 = vadd.f32 %v3043_v29, %v485_v36  ;;  %v1211_v12 = vadd.f32 %v3043_v29, %v1210_v13 }
 0x2aa   :  { %v1777_v10 = vmax.f32 %v1719_v23, 0.0  ;;  %v2063_v5 = vadd.f32 %v2062_v57, %v2032_v35  ;;  %v301_v57 = vadd.f32 %v300_v49, %v299_v9 }
 0x2ab   :  { %v519_v42 = vmax.f32 %v486_v6, 0.0  ;;  %v1268_v14 = vmax.f32 %v1211_v12, 0.0 }
 0x2ac   :  { %v1808_v37 = vadd.f32 %v1807_v27, %v1777_v10 }
 0x2ad   :  { %v550_v34 = vadd.f32 %v549_v28, %v519_v42  ;;  %v1299_v2 = vadd.f32 %v1298_v43, %v1268_v14  ;;  %v1975_v62 = vpop.f32.mrf.mxu3 }
 0x2ae   :  { %v1976_v19 = vadd.f32 %v3043_v29, %v1975_v62 }
 0x2af   :  { %v551_v50 = vrot.slane %v550_v34, 4  ;;  %v1720_v44 = vpop.f32.mrf.mxu2 }
 0x2b0   :  { %v1721_v48 = vadd.f32 %v3043_v29, %v1720_v44  ;;  %v2033_v8 = vmax.f32 %v1976_v19, 0.0  ;;  %v1213_v61 = vpop.f32.mrf.mxu0  ;;  %v1428_v30 = vpop.f32.mrf.mxu1 }
 0x2b1   :  { %v552_v11 = vadd.f32 %v551_v50, %v550_v34  ;;  %v1214_v38 = vadd.f32 %v3043_v29, %v1213_v61  ;;  %v1429_v33 = vadd.f32 %v3043_v29, %v1428_v30 }
 0x2b2   :  { %v1778_v0 = vmax.f32 %v1721_v48, 0.0  ;;  %v2064_v53 = vadd.f32 %v2063_v5, %v2033_v8 }
 0x2b3   :  { %v553_v46 = vrot.slane %v552_v11, 2  ;;  %v1269_v39 = vmax.f32 %v1214_v38, 0.0  ;;  %2336 = vmatmul.msk.bf16.gmra.mxu1 %vm88_vm2, %v3065_v7  ;;  %v1508_v35 = vmax.f32 %v1429_v33, 0.0 }
 0x2b4   :  { %v1809_v25 = vadd.f32 %v1808_v37, %v1778_v0 }
 0x2b5   :  { %v554_v1 = vadd.f32 %v553_v46, %v552_v11  ;;  %v1300_v17 = vadd.f32 %v1299_v2, %v1269_v39  ;;  %v1978_v15 = vpop.f32.mrf.mxu3 }
 0x2b6   :  { %v1979_v24 = vadd.f32 %v3043_v29, %v1978_v15 }
 0x2b7   :  { %v555_v4 = vrot.slane %v554_v1, 1  ;;  %v1723_v56 = vpop.f32.mrf.mxu2 }
 0x2b8   :  { %v1724_v27 = vadd.f32 %v3043_v29, %v1723_v56  ;;  %v2034_v28 = vmax.f32 %v1979_v24, 0.0  ;;  %v1215_v43 = vpop.f32.mrf.mxu0  ;;  %v1430_v7 = vpop.f32.mrf.mxu1 }
 0x2b9   :  { %v556_v32 = vadd.f32 %v555_v4, %v554_v1  ;;  %v1216_v22 = vadd.f32 %v3043_v29, %v1215_v43  ;;  %v1431_v59 = vadd.f32 %v3043_v29, %v1430_v7 }
 0x2ba   :  { %v1779_v3 = vmax.f32 %v1724_v27, 0.0  ;;  %v2065_v55 = vadd.f32 %v2064_v53, %v2034_v28 }
 0x2bb   :  { %v2089_v23 = vsel %vm2088_vm3, %v301_v57, %v556_v32  ;;  %v1270_v36 = vmax.f32 %v1216_v22, 0.0  ;;  %v1509_v13 = vmax.f32 %v1431_v59, 0.0 }
 0x2bc   :  { %v2091_v6 = vsel %vm2090_vm4, %v2089_v23, %v811_v31  ;;  %v1810_v12 = vadd.f32 %v1809_v25, %v1779_v3 }
 0x2bd   :  { %v1301_v40 = vadd.f32 %v1300_v17, %v1270_v36  ;;  %v1540_v10 = vadd.f32 %v1509_v13, %v1508_v35  ;;  %v1980_v5 = vpop.f32.mrf.mxu3  ;;  %v3233_v45 = vsel %vm2092_vm5, %v2091_v6, %v1066_v54 }
 0x2be   :  { %v1981_v42 = vadd.f32 %v3043_v29, %v1980_v5 }
 0x2bf   :  { %v1725_v14 = vpop.f32.mrf.mxu2 }
 0x2c0   :  { %v1726_v16 = vadd.f32 %v3043_v29, %v1725_v14  ;;  %v2035_v37 = vmax.f32 %v1981_v42, 0.0  ;;  %v1218_v34 = vpop.f32.mrf.mxu0  ;;  %v1433_v2 = vpop.f32.mrf.mxu1 }
 0x2c1   :  { %v1219_v62 = vadd.f32 %v3043_v29, %v1218_v34  ;;  %v1434_v47 = vadd.f32 %v3043_v29, %v1433_v2 }
 0x2c2   :  { %v1780_v19 = vmax.f32 %v1726_v16, 0.0  ;;  %v2066_v9 = vadd.f32 %v2065_v55, %v2035_v37 }
 0x2c3   :  { %v1271_v50 = vmax.f32 %v1219_v62, 0.0  ;;  %v1510_v44 = vmax.f32 %v1434_v47, 0.0  ;;  %2337 = vmatmul.msk.bf16.gmra.mxu1 %vm88_vm2, %v3084_v21 }
 0x2c4   :  { %v1811_v51 = vadd.f32 %v1810_v12, %v1780_v19 }
 0x2c5   :  { %v1302_v48 = vadd.f32 %v1301_v40, %v1271_v50  ;;  %v1541_v8 = vadd.f32 %v1540_v10, %v1510_v44  ;;  %v1983_v61 = vpop.f32.mrf.mxu3 }
 0x2c6   :  { %v1984_v30 = vadd.f32 %v3043_v29, %v1983_v61 }
 0x2c7   :  { %v1728_v11 = vpop.f32.mrf.mxu2 }
 0x2c8   :  { %v1729_v38 = vadd.f32 %v3043_v29, %v1728_v11  ;;  %v2036_v58 = vmax.f32 %v1984_v30, 0.0  ;;  %v1220_v0 = vpop.f32.mrf.mxu0  ;;  %v1435_v53 = vpop.f32.mrf.mxu1 }
 0x2c9   :  { %v1221_v49 = vadd.f32 %v3043_v29, %v1220_v0  ;;  %v1436_v46 = vadd.f32 %v3043_v29, %v1435_v53 }
 0x2ca   :  { %v1781_v39 = vmax.f32 %v1729_v38, 0.0  ;;  %v2067_v18 = vadd.f32 %v2066_v9, %v2036_v58 }
 0x2cb   :  { %v1272_v25 = vmax.f32 %v1221_v49, 0.0  ;;  %v1511_v21 = vmax.f32 %v1436_v46, 0.0 }
 0x2cc   :  { %v1812_v1 = vadd.f32 %v1811_v51, %v1781_v39 }
 0x2cd   :  { %v1303_v17 = vadd.f32 %v1302_v48, %v1272_v25  ;;  %v1542_v15 = vadd.f32 %v1541_v8, %v1511_v21  ;;  %v1985_v41 = vpop.f32.mrf.mxu3 }
 0x2ce   :  { %v1986_v24 = vadd.f32 %v3043_v29, %v1985_v41 }
 0x2cf   :  { %v1730_v57 = vpop.f32.mrf.mxu2 }
 0x2d0   :  { %v1731_v4 = vadd.f32 %v3043_v29, %v1730_v57  ;;  %v2037_v33 = vmax.f32 %v1986_v24, 0.0  ;;  %v1223_v56 = vpop.f32.mrf.mxu0  ;;  %v1438_v54 = vpop.f32.mrf.mxu1 }
 0x2d1   :  { %v1224_v27 = vadd.f32 %v3043_v29, %v1223_v56  ;;  %v1439_v28 = vadd.f32 %v3043_v29, %v1438_v54 }
 0x2d2   :  { %v1782_v43 = vmax.f32 %v1731_v4, 0.0  ;;  %v2068_v7 = vadd.f32 %v2067_v18, %v2037_v33 }
 0x2d3   :  { %v1273_v32 = vmax.f32 %v1224_v27, 0.0  ;;  %v1512_v22 = vmax.f32 %v1439_v28, 0.0  ;;  %2338 = vmatmul.msk.bf16.gmra.mxu1 %vm88_vm2, %v3114_v60 }
 0x2d4   :  { %v1813_v59 = vadd.f32 %v1812_v1, %v1782_v43 }
 0x2d5   :  { %v3251_v31 = vadd.f32 %v1303_v17, %v1273_v32  ;;  %v1543_v3 = vadd.f32 %v1542_v15, %v1512_v22  ;;  %v1988_v55 = vpop.f32.mrf.mxu3 }
 0x2d6   :  { %v1989_v23 = vadd.f32 %v3043_v29, %v1988_v55 }
 0x2d7   :  { %v1733_v35 = vpop.f32.mrf.mxu2 }
 0x2d8   :  { %v1734_v36 = vadd.f32 %v3043_v29, %v1733_v35  ;;  %v2038_v13 = vmax.f32 %v1989_v23, 0.0  ;;  %v1225_v6 = vpop.f32.mrf.mxu0  ;;  %v1440_v12 = vpop.f32.mrf.mxu1 }
 0x2d9   :  { %v1441_v40 = vadd.f32 %v3043_v29, %v1440_v12 }
 0x2da   :  { %v1783_v10 = vmax.f32 %v1734_v36, 0.0  ;;  %v3256_v5 = vadd.f32 %v2068_v7, %v2038_v13 }
 0x2db   :  { %v1513_v42 = vmax.f32 %v1441_v40, 0.0 }
 0x2dc   :  { %v3258_v60 = vadd.f32 %v1813_v59, %v1783_v10 }
 0x2dd   :  { %v1544_v14 = vadd.f32 %v1543_v3, %v1513_v42 }
 0x2e0   :  { %v1228_v16 = vpop.f32.mrf.mxu0  ;;  %v1443_v37 = vpop.f32.mrf.mxu1 }
 0x2e1   :  { %v1444_v34 = vadd.f32 %v3043_v29, %v1443_v37 }
 0x2e3   :  { %v1514_v2 = vmax.f32 %v1444_v34, 0.0  ;;  %2339 = vmatmul.msk.bf16.gmra.mxu1 %vm88_vm2, %v3135_v20  ;;  %v3270_v20 = vld [vmem:[%s3359_s2] ss:$0 sm:$0xff]  ;;  %s2484_s2 = smov [#allocation2]  }
 0x2e4   :  { %v1226_v24 = vadd.f32 %v3270_v20, %v1225_v6  ;;  %v1229_v4 = vadd.f32 %v3270_v20, %v1228_v16  ;;  %s2113_s13 = sshll.u32 %s2484_s2, 4  ;;  %s2114_s13 = int_to_ptr.vmem [resolvable:$true] %s2113_s13 }
 0x2e5   :  { %v1545_v62 = vadd.f32 %v1544_v14, %v1514_v2 }
 0x2e6   :  { %v1275_v27 = vmax.f32 %v1229_v4, 0.0 }
 0x2e8   :  { %v1230_v47 = vpop.f32.mrf.mxu0  ;;  %v1445_v19 = vpop.f32.mrf.mxu1 }
 0x2e9   :  { %v1446_v9 = vadd.f32 %v3043_v29, %v1445_v19  ;;  %v1231_v56 = vadd.f32 %v3270_v20, %v1230_v47 }
 0x2eb   :  { %v1515_v50 = vmax.f32 %v1446_v9, 0.0  ;;  %v1276_v22 = vmax.f32 %v1231_v56, 0.0 }
 0x2ed   :  { %v1546_v44 = vadd.f32 %v1545_v62, %v1515_v50 }
 0x2f0   :  { %v1233_v51 = vpop.f32.mrf.mxu0  ;;  %v1448_v48 = vpop.f32.mrf.mxu1 }
 0x2f1   :  { %v1449_v8 = vadd.f32 %v3043_v29, %v1448_v48  ;;  %v1234_v28 = vadd.f32 %v3270_v20, %v1233_v51 }
 0x2f3   :  { %v1516_v61 = vmax.f32 %v1449_v8, 0.0  ;;  %2340 = vmatmul.msk.bf16.gmra.mxu1 %vm88_vm2, %v3152_v52  ;;  %v1277_v23 = vmax.f32 %v1234_v28, 0.0 }
 0x2f5   :  { %v1547_v30 = vadd.f32 %v1546_v44, %v1516_v61 }
 0x2f8   :  { %v1235_v11 = vpop.f32.mrf.mxu0  ;;  %v1450_v38 = vpop.f32.mrf.mxu1 }
 0x2f9   :  { %v1451_v58 = vadd.f32 %v3270_v20, %v1450_v38  ;;  %v1236_v59 = vadd.f32 %v3270_v20, %v1235_v11 }
 0x2fb   :  { %v1517_v0 = vmax.f32 %v1451_v58, 0.0  ;;  %v1278_v13 = vmax.f32 %v1236_v59, 0.0 }
 0x2fd   :  { %v1548_v53 = vadd.f32 %v1547_v30, %v1517_v0 }
 0x300   :  { %v1238_v49 = vpop.f32.mrf.mxu0  ;;  %v1453_v46 = vpop.f32.mrf.mxu1 }
 0x301   :  { %v1454_v29 = vadd.f32 %v3270_v20, %v1453_v46 }
 0x303   :  { %v1518_v39 = vmax.f32 %v1454_v29, 0.0  ;;  %2341 = vmatmul.msk.bf16.gmra.mxu1 %vm88_vm2, %v3173_v63  ;;  %v1274_v63 = vmax.f32 %v1226_v24, 0.0 }
 0x305   :  { %v1549_v52 = vadd.f32 %v1548_v53, %v1518_v39  ;;  %v1305_v32 = vadd.f32 %v3251_v31, %v1274_v63  ;;  %v1370_v31 = vpop.trf.xlu1 }
 0x307   :  { %v1306_v55 = vadd.f32 %v1305_v32, %v1275_v27 }
 0x308   :  { %v1240_v18 = vpop.f32.mrf.mxu0  ;;  %v1455_v25 = vpop.f32.mrf.mxu1 }
 0x309   :  { %v1456_v21 = vadd.f32 %v3270_v20, %v1455_v25  ;;  %v1307_v36 = vadd.f32 %v1306_v55, %v1276_v22  ;;  %v1241_v6 = vadd.f32 %v3270_v20, %v1240_v18 }
 0x30b   :  { %v1519_v1 = vmax.f32 %v1456_v21, 0.0  ;;  %v1308_v40 = vadd.f32 %v1307_v36, %v1277_v23  ;;  %v1280_v34 = vmax.f32 %v1241_v6, 0.0 }
 0x30d   :  { %v1550_v17 = vadd.f32 %v1549_v52, %v1519_v1  ;;  %v1309_v37 = vadd.f32 %v1308_v40, %v1278_v13  ;;  %v1735_v1 = vpop.f32.mrf.mxu2 }
 0x310   :  { %v1243_v15 = vpop.f32.mrf.mxu0  ;;  %v1458_v41 = vpop.f32.mrf.mxu1 }
 0x311   :  { %v1459_v57 = vadd.f32 %v3270_v20, %v1458_v41  ;;  %v1244_v42 = vadd.f32 %v3270_v20, %v1243_v15  ;;  %v1990_v41 = vpop.f32.mrf.mxu3 }
 0x313   :  { %v1520_v33 = vmax.f32 %v1459_v57, 0.0  ;;  %2342 = vmatmul.msk.bf16.gmra.mxu1 %vm88_vm2, %v3197_v26  ;;  %v1239_v26 = vadd.f32 %v3270_v20, %v1238_v49  ;;  %v1281_v19 = vmax.f32 %v1244_v42, 0.0 }
 0x315   :  { %v1551_v54 = vadd.f32 %v1550_v17, %v1520_v33  ;;  %v1279_v10 = vmax.f32 %v1239_v26, 0.0  ;;  %v1738_v28 = vpop.f32.mrf.mxu2 }
 0x317   :  { %v1310_v47 = vadd.f32 %v1309_v37, %v1279_v10 }
 0x318   :  { %v1245_v43 = vpop.f32.mrf.mxu0  ;;  %v1460_v7 = vpop.f32.mrf.mxu1 }
 0x319   :  { %v1461_v3 = vadd.f32 %v3270_v20, %v1460_v7  ;;  %v1246_v2 = vadd.f32 %v3270_v20, %v1245_v43  ;;  %v1311_v44 = vadd.f32 %v1310_v47, %v1280_v34  ;;  %v1993_v7 = vpop.f32.mrf.mxu3 }
 0x31b   :  { %v1521_v35 = vmax.f32 %v1461_v3, 0.0  ;;  %v1282_v51 = vmax.f32 %v1246_v2, 0.0  ;;  %v1312_v8 = vadd.f32 %v1311_v44, %v1281_v19 }
 0x31d   :  { %v1552_v12 = vadd.f32 %v1551_v54, %v1521_v35  ;;  %v1313_v38 = vadd.f32 %v1312_v8, %v1282_v51  ;;  %v1740_v55 = vpop.f32.mrf.mxu2 }
 0x320   :  { %v1248_v14 = vpop.f32.mrf.mxu0  ;;  %v1463_v16 = vpop.f32.mrf.mxu1 }
 0x321   :  { %v1464_v62 = vadd.f32 %v3270_v20, %v1463_v16  ;;  %v1249_v9 = vadd.f32 %v3270_v20, %v1248_v14  ;;  %v1995_v23 = vpop.f32.mrf.mxu3 }
 0x323   :  { %v1522_v50 = vmax.f32 %v1464_v62, 0.0  ;;  %2343 = vmatmul.msk.bf16.gmra.mxu1 %vm88_vm2, %v1370_v31  ;;  %v1283_v61 = vmax.f32 %v1249_v9, 0.0 }
 0x325   :  { %v1553_v48 = vadd.f32 %v1552_v12, %v1522_v50  ;;  %v1314_v53 = vadd.f32 %v1313_v38, %v1283_v61  ;;  %v1743_v12 = vpop.f32.mrf.mxu2  ;;  %v1991_v61 = vadd.f32 %v3270_v20, %v1990_v41  ;;  %v1994_v38 = vadd.f32 %v3270_v20, %v1993_v7 }
 0x328   :  { %v1250_v30 = vpop.f32.mrf.mxu0  ;;  %v1465_v11 = vpop.f32.mrf.mxu1 }
 0x329   :  { %v1251_v58 = vadd.f32 %v3270_v20, %v1250_v30  ;;  %v1466_v0 = vadd.f32 %v3270_v20, %v1465_v11  ;;  %v1998_v40 = vpop.f32.mrf.mxu3  ;;  %v1736_v11 = vadd.f32 %v3270_v20, %v1735_v1 }
 0x32b   :  { %v1284_v49 = vmax.f32 %v1251_v58, 0.0  ;;  %v1523_v46 = vmax.f32 %v1466_v0, 0.0  ;;  %v1739_v58 = vadd.f32 %v3270_v20, %v1738_v28  ;;  %v2039_v0 = vmax.f32 %v1991_v61, 0.0 }
 0x32d   :  { %v1315_v29 = vadd.f32 %v1314_v53, %v1284_v49  ;;  %v1554_v39 = vadd.f32 %v1553_v48, %v1523_v46  ;;  %v1745_v14 = vpop.f32.mrf.mxu2  ;;  %v1996_v53 = vadd.f32 %v3270_v20, %v1995_v23  ;;  %v1784_v46 = vmax.f32 %v1736_v11, 0.0 }
 0x32f   :  { %v1316_v52 = vrot.slane %v1315_v29, 4  ;;  %v2041_v1 = vmax.f32 %v1996_v53, 0.0 }
 0x330   :  { %v1468_v18 = vpop.f32.mrf.mxu1 }
 0x331   :  { %v1317_v25 = vadd.f32 %v1316_v52, %v1315_v29  ;;  %v1469_v21 = vadd.f32 %v3270_v20, %v1468_v18  ;;  %v2000_v16 = vpop.f32.mrf.mxu3  ;;  %v1741_v29 = vadd.f32 %v3270_v20, %v1740_v55  ;;  %v1999_v52 = vadd.f32 %v3270_v20, %v1998_v40 }
 0x332   :  { %v1785_v18 = vmax.f32 %v1739_v58, 0.0 }
 0x333   :  { %v1318_v17 = vrot.slane %v1317_v25, 2  ;;  %v1524_v15 = vmax.f32 %v1469_v21, 0.0  ;;  %v2070_v21 = vadd.f32 %v3256_v5, %v2039_v0  ;;  %v1786_v41 = vmax.f32 %v1741_v29, 0.0 }
 0x335   :  { %v1319_v24 = vadd.f32 %v1318_v17, %v1317_v25  ;;  %v1555_v57 = vadd.f32 %v1554_v39, %v1524_v15  ;;  %v1748_v34 = vpop.f32.mrf.mxu2  ;;  %v2040_v39 = vmax.f32 %v1994_v38, 0.0  ;;  %v1744_v25 = vadd.f32 %v3270_v20, %v1743_v12 }
 0x336   :  { %v2001_v17 = vadd.f32 %v3270_v20, %v2000_v16  ;;  %v1815_v15 = vadd.f32 %v3258_v60, %v1784_v46 }
 0x337   :  { %v1320_v4 = vrot.slane %v1319_v24, 1  ;;  %v1787_v28 = vmax.f32 %v1744_v25, 0.0 }
 0x338   :  { %v1470_v33 = vpop.f32.mrf.mxu1  ;;  %v2043_v5 = vmax.f32 %v2001_v17, 0.0 }
 0x339   :  { %v1321_v63 = vadd.f32 %v1320_v4, %v1319_v24  ;;  %v1471_v56 = vadd.f32 %v3270_v20, %v1470_v33  ;;  %v2003_v2 = vpop.f32.mrf.mxu3  ;;  %v1746_v24 = vadd.f32 %v3270_v20, %v1745_v14  ;;  %v2071_v4 = vadd.f32 %v2070_v21, %v2040_v39 }
 0x33a   :  { %v2042_v33 = vmax.f32 %v1999_v52, 0.0 }
 0x33b   :  { %v3299_v54 = vsel %vm2094_vm6, %v3233_v45, %v1321_v63  ;;  %v1525_v27 = vmax.f32 %v1471_v56, 0.0  ;;  %v2004_v63 = vadd.f32 %v3270_v20, %v2003_v2  ;;  %v2072_v7 = vadd.f32 %v2071_v4, %v2041_v1 }
 0x33c   :  { %v1788_v60 = vmax.f32 %v1746_v24, 0.0 }
 0x33d   :  { %v1556_v43 = vadd.f32 %v1555_v57, %v1525_v27  ;;  %v1750_v47 = vpop.f32.mrf.mxu2  ;;  %v1816_v27 = vadd.f32 %v1815_v15, %v1785_v18  ;;  %v2073_v55 = vadd.f32 %v2072_v7, %v2042_v33  ;;  %v2044_v23 = vmax.f32 %v2004_v63, 0.0 }
 0x340   :  { %v1473_v32 = vpop.f32.mrf.mxu1 }
 0x341   :  { %v1474_v22 = vadd.f32 %v3270_v20, %v1473_v32  ;;  %v2005_v19 = vpop.f32.mrf.mxu3 }
 0x342   :  { %v2006_v32 = vadd.f32 %v3270_v20, %v2005_v19 }
 0x343   :  { %v1526_v59 = vmax.f32 %v1474_v22, 0.0 }
 0x344   :  { %v2045_v12 = vmax.f32 %v2006_v32, 0.0 }
 0x345   :  { %v1557_v3 = vadd.f32 %v1556_v43, %v1526_v59  ;;  %v1753_v44 = vpop.f32.mrf.mxu2  ;;  %v1749_v43 = vadd.f32 %v3270_v20, %v1748_v34  ;;  %v1817_v59 = vadd.f32 %v1816_v27, %v1786_v41 }
 0x348   :  { %v1475_v26 = vpop.f32.mrf.mxu1 }
 0x349   :  { %v1476_v35 = vadd.f32 %v3270_v20, %v1475_v26  ;;  %v2008_v51 = vpop.f32.mrf.mxu3  ;;  %v1751_v26 = vadd.f32 %v3270_v20, %v1750_v47 }
 0x34a   :  { %v2009_v40 = vadd.f32 %v3270_v20, %v2008_v51 }
 0x34b   :  { %v1527_v36 = vmax.f32 %v1476_v35, 0.0  ;;  %v1818_v35 = vadd.f32 %v1817_v59, %v1787_v28 }
 0x34d   :  { %v1558_v13 = vadd.f32 %v1557_v3, %v1527_v36  ;;  %v1755_v8 = vpop.f32.mrf.mxu2  ;;  %v1789_v36 = vmax.f32 %v1749_v43, 0.0 }
 0x34e   :  { %v1756_v2 = vadd.f32 %v3270_v20, %v1755_v8 }
 0x350   :  { %v1478_v6 = vpop.f32.mrf.mxu1  ;;  %v1792_v39 = vmax.f32 %v1756_v2, 0.0 }
 0x351   :  { %v1479_v45 = vadd.f32 %v3270_v20, %v1478_v6  ;;  %v2010_v30 = vpop.f32.mrf.mxu3  ;;  %v2074_v6 = vadd.f32 %v2073_v55, %v2043_v5 }
 0x352   :  { %v2011_v47 = vadd.f32 %v3270_v20, %v2010_v30 }
 0x353   :  { %v1528_v10 = vmax.f32 %v1479_v45, 0.0  ;;  %v1754_v45 = vadd.f32 %v3270_v20, %v1753_v44  ;;  %v2075_v34 = vadd.f32 %v2074_v6, %v2044_v23  ;;  %v2046_v44 = vmax.f32 %v2009_v40, 0.0 }
 0x354   :  { %v2047_v52 = vmax.f32 %v2011_v47, 0.0 }
 0x355   :  { %v3304_v42 = vadd.f32 %v1558_v13, %v1528_v10  ;;  %v1758_v57 = vpop.f32.mrf.mxu2  ;;  %v1819_v10 = vadd.f32 %v1818_v35, %v1788_v60  ;;  %v2076_v38 = vadd.f32 %v2075_v34, %v2045_v12  ;;  %v1791_v58 = vmax.f32 %v1754_v45, 0.0 }
 0x356   :  { %v1759_v51 = vadd.f32 %v3270_v20, %v1758_v57 }
 0x357   :  { %v1820_v19 = vadd.f32 %v1819_v10, %v1789_v36  ;;  %v2077_v15 = vadd.f32 %v2076_v38, %v2046_v44 }
 0x358   :  { %v1480_v31 = vpop.f32.mrf.mxu1  ;;  %v1793_v41 = vmax.f32 %v1759_v51, 0.0 }
 0x359   :  { %v2013_v56 = vpop.f32.mrf.mxu3  ;;  %v1481_v3 = vadd.f32 %v3270_v20, %v1480_v31  ;;  %v1790_v31 = vmax.f32 %v1751_v26, 0.0  ;;  %v2078_v33 = vadd.f32 %v2077_v15, %v2047_v52 }
 0x35b   :  { %v1529_v14 = vmax.f32 %v1481_v3, 0.0  ;;  %v1821_v30 = vadd.f32 %v1820_v19, %v1790_v31 }
 0x35d   :  { %v1760_v61 = vpop.f32.mrf.mxu2  ;;  %v1560_v46 = vadd.f32 %v3304_v42, %v1529_v14  ;;  %v1822_v17 = vadd.f32 %v1821_v30, %v1791_v58 }
 0x35f   :  { %v1823_v4 = vadd.f32 %v1822_v17, %v1792_v39 }
 0x360   :  { %v1483_v37 = vpop.f32.mrf.mxu1 }
 0x361   :  { %v1484_v13 = vadd.f32 %v3270_v20, %v1483_v37  ;;  %v2015_v0 = vpop.f32.mrf.mxu3  ;;  %v1824_v7 = vadd.f32 %v1823_v4, %v1793_v41 }
 0x362   :  { %v2016_v18 = vadd.f32 %v3270_v20, %v2015_v0 }
 0x363   :  { %v1530_v11 = vmax.f32 %v1484_v13, 0.0 }
 0x365   :  { %v1561_v25 = vadd.f32 %v1560_v46, %v1530_v11 }
 0x368   :  { %v1485_v62 = vpop.f32.mrf.mxu1 }
 0x369   :  { %v1486_v16 = vadd.f32 %v3270_v20, %v1485_v62  ;;  %v2014_v62 = vadd.f32 %v3270_v20, %v2013_v56  ;;  %v2049_v56 = vmax.f32 %v2016_v18, 0.0 }
 0x36b   :  { %v1531_v29 = vmax.f32 %v1486_v16, 0.0  ;;  %v2048_v42 = vmax.f32 %v2014_v62, 0.0 }
 0x36d   :  { %v1562_v24 = vadd.f32 %v1561_v25, %v1531_v29 }
 0x370   :  { %v1488_v9 = vpop.f32.mrf.mxu1 }
 0x371   :  { %v1489_v37 = vadd.f32 %v3270_v20, %v1488_v9  ;;  %v1761_v9 = vadd.f32 %v3270_v20, %v1760_v61 }
 0x373   :  { %v1532_v21 = vmax.f32 %v1489_v37, 0.0  ;;  %v1794_v63 = vmax.f32 %v1761_v9, 0.0 }
 0x375   :  { %v1563_v27 = vadd.f32 %v1562_v24, %v1532_v21  ;;  %v1825_v3 = vadd.f32 %v1824_v7, %v1794_v63 }
 0x377   :  { %v1826_v13 = vrot.slane %v1825_v3, 4 }
 0x378   :  { %v3306_v50 = vpop.f32.mrf.mxu1 }
 0x379   :  { %v1491_v8 = vadd.f32 %v3270_v20, %v3306_v50  ;;  %v1827_v14 = vadd.f32 %v1826_v13, %v1825_v3 }
 0x37b   :  { %v1533_v57 = vmax.f32 %v1491_v8, 0.0  ;;  %v1828_v47 = vrot.slane %v1827_v14, 2 }
 0x37d   :  { %v1564_v32 = vadd.f32 %v1563_v27, %v1533_v57  ;;  %v1829_v37 = vadd.f32 %v1828_v47, %v1827_v14 }
 0x37f   :  { %v1830_v51 = vrot.slane %v1829_v37, 1 }
 0x380   :  { %v3308_v48 = vpop.f32.mrf.mxu1 }
 0x381   :  { %v1494_v1 = vadd.f32 %v3270_v20, %v3308_v48  ;;  %v2079_v48 = vadd.f32 %v2078_v33, %v2048_v42  ;;  %v1831_v46 = vadd.f32 %v1830_v51, %v1829_v37 }
 0x383   :  { %v1534_v28 = vmax.f32 %v1494_v1, 0.0  ;;  %v2080_v55 = vadd.f32 %v2079_v48, %v2049_v56 }
 0x385   :  { %v1565_v23 = vadd.f32 %v1564_v32, %v1534_v28  ;;  %v2081_v6 = vrot.slane %v2080_v55, 4 }
 0x387   :  { %v2082_v16 = vadd.f32 %v2081_v6, %v2080_v55 }
 0x388   :  { %v3315_v49 = vpop.f32.mrf.mxu1 }
 0x389   :  { %v1496_v50 = vadd.f32 %v3270_v20, %v3315_v49  ;;  %v2083_v19 = vrot.slane %v2082_v16, 2 }
 0x38b   :  { %v1535_v59 = vmax.f32 %v1496_v50, 0.0  ;;  %v2084_v38 = vadd.f32 %v2083_v19, %v2082_v16 }
 0x38d   :  { %v1566_v35 = vadd.f32 %v1565_v23, %v1535_v59  ;;  %v2085_v0 = vrot.slane %v2084_v38, 1 }
 0x390   :  { %v1498_v22 = vpop.f32.mrf.mxu1 }
 0x391   :  { %v1499_v43 = vadd.f32 %v3270_v20, %v1498_v22 }
 0x393   :  { %v1536_v26 = vmax.f32 %v1499_v43, 0.0 }
 0x395   :  { %v1567_v12 = vadd.f32 %v1566_v35, %v1536_v26 }
 0x398   :  { %v1500_v53 = vpop.f32.mrf.mxu1 }
 0x399   :  { %v1501_v60 = vadd.f32 %v3270_v20, %v1500_v53 }
 0x39b   :  { %v1537_v36 = vmax.f32 %v1501_v60, 0.0 }
 0x39d   :  { %v1568_v40 = vadd.f32 %v1567_v12, %v1537_v36 }
 0x3a0   :  { %v1503_v5 = vpop.f32.mrf.mxu1 }
 0x3a1   :  { %v1504_v49 = vadd.f32 %v3270_v20, %v1503_v5 }
 0x3a3   :  { %v1538_v45 = vmax.f32 %v1504_v49, 0.0 }
 0x3a5   :  { %v1569_v34 = vadd.f32 %v1568_v40, %v1538_v45 }
 0x3a8   :  { %v1505_v22 = vpop.f32.mrf.mxu1 }
 0x3a9   :  { %v1506_v10 = vadd.f32 %v3270_v20, %v1505_v22  ;;  %v2086_v20 = vadd.f32 %v2085_v0, %v2084_v38 }
 0x3ab   :  { %v1539_v31 = vmax.f32 %v1506_v10, 0.0 }
 0x3ad   :  { %v1570_v2 = vadd.f32 %v1569_v34, %v1539_v31 }
 0x3af   :  { %v1571_v61 = vrot.slane %v1570_v2, 4 }
 0x3b1   :  { %v1572_v11 = vadd.f32 %v1571_v61, %v1570_v2 }
 0x3b3   :  { %v1573_v58 = vrot.slane %v1572_v11, 2 }
 0x3b5   :  { %v1574_v44 = vadd.f32 %v1573_v58, %v1572_v11 }
 0x3b7   :  { %v1575_v53 = vrot.slane %v1574_v44, 1 }
 0x3b9   :  { %v1576_v62 = vadd.f32 %v1575_v53, %v1574_v44 }
 0x3bb   :  { %v2096_v29 = vsel %vm137_vm0, %v3299_v54, %v1576_v62 }
 0x3bc   :  { %v2097_v8 = vsel %vm138_vm1, %v2096_v29, %v1831_v46 }
 0x3bd   :  { %v2099_v30 = vsel %vm2098_vm7, %v2097_v8, %v2086_v20 }
 0x3be   :  { %v2106_v39 = vmul.f32 0.00390625, %v2099_v30 }
 0x3c0   :  { %2107 = vst [vmem:[#allocation2] sm:$0xff] %v2106_v39 }
 0x3c1   :  { %2118 = dma.vmem_to_hbm [thread:$0]  %s2114_s13, 128, %s2116_s16, [#allocation3]  }
 0x3c2   :  { %2481 = dma.done.wait [#allocation3], 128  }
 0x3c3   :  { %2482 = vsyncadd [#allocation3], 4294967168 }
 0x3c4   :  { %2123 = vsyncpa [#allocation3], 1 }

</bundles_post_ra>
